<compile_context>
chip_gen: v7x
topology: tpu7x:2x2x1
jax: 0.10.0
libtpu: 0.0.40
codegen_flags: <defaults>
</compile_context>

<pallas_src>
import functools

import jax
import jax.numpy as jnp
from jax.experimental import pallas as pl
from jax.experimental.pallas import tpu as pltpu

BN_EPS = 1e-5


def _round_up(v, m):
    return (v + m - 1) // m * m


def _cdiv(a, b):
    return -(-a // b)


def _vmem_capacity_bytes():
    try:
        return int(pltpu.get_tpu_info().vmem_capacity_bytes)
    except Exception:
        return 64 * 1024 * 1024  # conservative fallback (v7x per-core physical VMEM)


def _per_step_vmem_bytes(tl, c_in_p, c_out, c_out_p, k, in_bytes):
    x_tile = tl * max(c_in_p, 128) * in_bytes        # lane-padded x main tile
    halo_tile = 8 * max(c_in_p, 128) * in_bytes      # halo rows (<= 8 sublanes)
    out_tile = _round_up(c_out, 8) * tl * 4          # channel-major f32 output tile
    weights = _round_up(k * c_in_p, 8) * c_out_p * 4  # resident folded weights
    temporaries = 3 * tl * c_out_p * 4               # y, im2col lhs, transpose
    return 2 * (x_tile + halo_tile + out_tile) + weights + temporaries


def _pick_tile_l(length, c_in_p, c_out, c_out_p, k, in_bytes):
    cap = _vmem_capacity_bytes()
    tl = max(128, min(2048, _round_up(length, 128)))
    while tl > 128 and _per_step_vmem_bytes(tl, c_in_p, c_out, c_out_p, k, in_bytes) > cap // 3:
        tl = max(128, _round_up(tl // 2, 128))
    return tl


def _conv_tile(x_ref, h_ref, w_ref, *, tl, k):
    """One Conv1d tile: folded-tap MXU matmul of shape (tl, K*C_in_p) @ (K*C_in_p, C_out_p)."""
    # Overlapping halo window (tl + K - 1 rows).  Upcast once (only c_in_p lanes wide) so the
    # shifted slices below relayout plain f32 rows rather than packed bf16 sublanes.
    xw = jnp.concatenate([x_ref[...], h_ref[...]], axis=0).astype(jnp.float32)
    if k > 1:
        lhs = jnp.concatenate([xw[kk:kk + tl, :] for kk in range(k)], axis=1)
    else:
        lhs = xw[:tl, :]
    return jnp.dot(lhs, w_ref[...], preferred_element_type=jnp.float32)


def _stats_kernel(x_ref, h_ref, w_ref, stats_ref, *, tl, k, length):
    """Pass 1: per-batch accumulation of per-channel (sum, sum of squares) of the conv output."""
    ji = pl.program_id(1)

    @pl.when(ji == 0)
    def _init():
        stats_ref[...] = jnp.zeros_like(stats_ref)

    y = _conv_tile(x_ref, h_ref, w_ref, tl=tl, k=k)          # (tl, c_out_p) f32

    @pl.when(ji < pl.num_programs(1) - 1)                     # interior tiles: unmasked
    def _acc_full():
        stats_ref[...] += jnp.concatenate(
            [jnp.sum(y, axis=0, keepdims=True),
             jnp.sum(y * y, axis=0, keepdims=True)], axis=0)

    @pl.when(ji == pl.num_programs(1) - 1)                    # last tile: mask rows >= L
    def _acc_masked():
        row = jax.lax.broadcasted_iota(jnp.int32, (tl, 1), 0)
        ym = jnp.where(ji * tl + row < length, y, 0.0)
        stats_ref[...] += jnp.concatenate(
            [jnp.sum(ym, axis=0, keepdims=True),
             jnp.sum(ym * ym, axis=0, keepdims=True)], axis=0)


def _apply_kernel(x_ref, h_ref, w_ref, ss_ref, a_ref, o_ref, *, tl, k):
    """Pass 2: recompute conv tile, folded BN (scale, shift), PReLU, channel-major store."""
    y = _conv_tile(x_ref, h_ref, w_ref, tl=tl, k=k)          # (tl, c_out_p) f32
    ss = ss_ref[...]
    y = y * ss[0:1, :] + ss[1:2, :]                           # folded BatchNorm
    a = a_ref[0]                                              # PReLU slope (SMEM scalar)
    y = jnp.where(y >= 0.0, y, a * y)
    # In-kernel transpose (XLU) so the HBM store is (C_out, tl): no 128-lane padding of a
    # small C_out and no host-side epilogue transpose.
    yt = y.T                                                  # (c_out_p, tl)
    o_ref[...] = yt[:o_ref.shape[0], :].astype(o_ref.dtype)


def conv_block_forward(x, weight, gamma, beta, prelu_a, *,
                       compute_dtype=jnp.bfloat16, tile_l=None):
    """x: (N, C_in, L).  weight: (C_out, C_in, K).  Returns (N, C_out, L) float32.

    Matches Conv1d(padding=K//2) -> BatchNorm1d (training-mode batch stats) -> PReLU.
    The conv bias is omitted: training-mode BN mean subtraction cancels it exactly.
    """
    n, c_in, length = x.shape
    c_out, _, k = weight.shape
    assert k % 2 == 1, "Conv1d with padding=k//2 assumes an odd kernel size"
    pad = k // 2

    c_in_p = _round_up(c_in, 8)
    c_out_p = _round_up(c_out, 128)
    in_bytes = jnp.dtype(compute_dtype).itemsize

    tl = tile_l if tile_l is not None else _pick_tile_l(length, c_in_p, c_out, c_out_p, k, in_bytes)
    assert tl % 128 == 0
    nt = _cdiv(length, tl)
    l_pad = nt * tl

    cap = _vmem_capacity_bytes()
    need = _per_step_vmem_bytes(tl, c_in_p, c_out, c_out_p, k, in_bytes)
    vmem_limit = int(min(int(cap * 0.7), max(32 * 1024 * 1024, 2 * need)))

    # ---- host prep (single fused pass over x: transpose + pad + cast) ----
    x_nlc = jnp.transpose(x, (0, 2, 1))                                    # (N, L, C_in)
    x_p = jnp.pad(x_nlc, ((0, 0), (pad, pad + (l_pad - length)), (0, c_in_p - c_in)))
    x_p = x_p.astype(compute_dtype)                                        # (N, l_pad+K-1, C_in_p)

    # Tiny halo side-array: the K-1 rows following each tile's main block (no big gather).
    halo_rows = max(k - 1, 1)
    if k > 1:
        halo = jnp.stack(
            [x_p[:, tl + r: tl + r + (nt - 1) * tl + 1: tl, :] for r in range(k - 1)],
            axis=2)                                                        # (N, NT, K-1, C_in_p)
    else:
        halo = jnp.zeros((n, nt, 1, c_in_p), compute_dtype)

    # Folded-tap weights: row (kk*C_in_p + c) of w2d holds weight[:, c, kk].
    w_t = jnp.transpose(weight, (2, 1, 0))                                 # (K, C_in, C_out)
    w_t = jnp.pad(w_t, ((0, 0), (0, c_in_p - c_in), (0, c_out_p - c_out)))
    w2d = w_t.reshape(k * c_in_p, c_out_p).astype(jnp.float32)

    x_spec = pl.BlockSpec((None, tl, c_in_p), lambda i, j: (i, j, 0))
    h_spec = pl.BlockSpec((None, None, halo_rows, c_in_p), lambda i, j: (i, j, 0, 0))
    w_spec = pl.BlockSpec((k * c_in_p, c_out_p), lambda i, j: (0, 0))

    # ---- pass 1: per-batch (sum, sumsq) partials ----
    partials = pl.pallas_call(
        functools.partial(_stats_kernel, tl=tl, k=k, length=length),
        out_shape=jax.ShapeDtypeStruct((n, 2, c_out_p), jnp.float32),
        grid=(n, nt),
        in_specs=[x_spec, h_spec, w_spec],
        out_specs=pl.BlockSpec((None, 2, c_out_p), lambda i, j: (i, 0, 0)),
        compiler_params=pltpu.CompilerParams(
            dimension_semantics=("parallel", "arbitrary"),
            vmem_limit_bytes=vmem_limit),
    )(x_p, halo, w2d)

    # ---- tiny host finalize: mean/var -> folded (scale, shift) ----
    sums = jnp.sum(partials, axis=0)                                       # (2, C_out_p)
    count = float(n * length)
    mean = sums[0] / count
    var = jnp.maximum(sums[1] / count - mean * mean, 0.0)
    inv_std = jax.lax.rsqrt(var + BN_EPS)
    gamma_p = jnp.pad(gamma.astype(jnp.float32), (0, c_out_p - c_out))
    beta_p = jnp.pad(beta.astype(jnp.float32), (0, c_out_p - c_out))
    scale = gamma_p * inv_std
    shift = beta_p - mean * scale
    ss = jnp.stack([scale, shift], axis=0)                                 # (2, C_out_p) f32
    a_arr = jnp.asarray(prelu_a, jnp.float32).reshape(1)

    # ---- pass 2: normalize + PReLU, channel-major (N, C_out, L_pad) output ----
    out = pl.pallas_call(
        functools.partial(_apply_kernel, tl=tl, k=k),
        out_shape=jax.ShapeDtypeStruct((n, c_out, l_pad), jnp.float32),
        grid=(n, nt),
        in_specs=[x_spec, h_spec, w_spec,
                  pl.BlockSpec((2, c_out_p), lambda i, j: (0, 0)),
                  pl.BlockSpec(memory_space=pltpu.MemorySpace.SMEM)],
        out_specs=pl.BlockSpec((None, c_out, tl), lambda i, j: (i, 0, j)),
        compiler_params=pltpu.CompilerParams(
            dimension_semantics=("parallel", "parallel"),
            vmem_limit_bytes=vmem_limit),
    )(x_p, halo, w2d, ss, a_arr)

    if l_pad != length:
        out = out[:, :, :length]
    return out


def conv_block_reference(x, weight, bias, gamma, beta, prelu_a):
    """Pure-JAX reference mirroring the PyTorch forward (training-mode BN, with conv bias)."""
    k = weight.shape[-1]
    y = jax.lax.conv_general_dilated(
        x, weight, window_strides=(1,), padding=[(k // 2, k // 2)],
        dimension_numbers=("NCH", "OIH", "NCH"))
    y = y + bias[None, :, None]
    mean = jnp.mean(y, axis=(0, 2), keepdims=True)
    var = jnp.mean((y - mean) ** 2, axis=(0, 2), keepdims=True)
    y = (y - mean) * jax.lax.rsqrt(var + BN_EPS)
    y = y * gamma[None, :, None] + beta[None, :, None]
    return jnp.where(y >= 0, y, prelu_a * y)


if __name__ == "__main__":
    fwd = jax.jit(conv_block_forward, static_argnames=("compute_dtype", "tile_l"))

    # ---- case 1: the original small shape ----
    N, C_IN, C_OUT, L, K = 2, 4, 8, 16, 3
    key = jax.random.PRNGKey(0)
    kx, kw, kb = jax.random.split(key, 3)
    x = jax.random.normal(kx, (N, C_IN, L), dtype=jnp.float32)
    weight = jax.random.normal(kw, (C_OUT, C_IN, K), dtype=jnp.float32) * 0.1
    bias = jax.random.normal(kb, (C_OUT,), dtype=jnp.float32) * 0.1
    gamma = jnp.ones((C_OUT,), jnp.float32)      # nn.BatchNorm1d default init
    beta = jnp.zeros((C_OUT,), jnp.float32)
    prelu_a = jnp.float32(0.25)                  # nn.PReLU default init

    ref = conv_block_reference(x, weight, bias, gamma, beta, prelu_a)

    out_bf16 = jax.block_until_ready(fwd(x, weight, gamma, beta, prelu_a))   # bf16 feed (default)
    assert out_bf16.shape == (N, C_OUT, L)
    assert jnp.allclose(out_bf16, ref, atol=1e-1, rtol=1e-1)

    out_f32 = jax.block_until_ready(
        fwd(x, weight, gamma, beta, prelu_a, compute_dtype=jnp.float32))
    assert out_f32.shape == (N, C_OUT, L)
    assert jnp.allclose(out_f32, ref, atol=1e-4, rtol=1e-4)

    # ---- case 2: odd sizes (channel padding, K=5, C_out not a multiple of 8, L masking) ----
    N2, C_IN2, C_OUT2, L2, K2 = 3, 3, 5, 13, 5
    k2x, k2w, k2b, k2g, k2beta = jax.random.split(jax.random.PRNGKey(1), 5)
    x2 = jax.random.normal(k2x, (N2, C_IN2, L2), dtype=jnp.float32)
    w2 = jax.random.normal(k2w, (C_OUT2, C_IN2, K2), dtype=jnp.float32) * 0.1
    b2 = jax.random.normal(k2b, (C_OUT2,), dtype=jnp.float32) * 0.1
    g2 = 1.0 + 0.1 * jax.random.normal(k2g, (C_OUT2,), dtype=jnp.float32)
    beta2 = 0.1 * jax.random.normal(k2beta, (C_OUT2,), dtype=jnp.float32)
    a2 = jnp.float32(0.1)

    ref2 = conv_block_reference(x2, w2, b2, g2, beta2, a2)

    out2_f32 = jax.block_until_ready(fwd(x2, w2, g2, beta2, a2, compute_dtype=jnp.float32))
    assert out2_f32.shape == (N2, C_OUT2, L2)
    assert jnp.allclose(out2_f32, ref2, atol=1e-4, rtol=1e-4)

    out2_bf16 = jax.block_until_ready(fwd(x2, w2, g2, beta2, a2))
    assert out2_bf16.shape == (N2, C_OUT2, L2)
    assert jnp.allclose(out2_bf16, ref2, atol=1e-1, rtol=1e-1)

    print("KERNEL_OK")
</pallas_src>

<mosaic_0001>
module attributes {stable_mosaic.version = 11 : i64} {
  func.func @_stats_kernel(%arg0: i32, %arg1: i32, %arg2: memref<1x128x8xbf16, #tpu.memory_space<vmem>>, %arg3: memref<1x1x2x8xbf16, #tpu.memory_space<vmem>>, %arg4: memref<24x128xf32, #tpu.memory_space<vmem>>, %arg5: memref<1x2x128xf32, #tpu.memory_space<vmem>>) attributes {dimension_semantics = [#tpu.dimension_semantics<parallel>, #tpu.dimension_semantics<arbitrary>], iteration_bounds = array<i64: 2, 1>, scalar_prefetch = 0 : i64, scratch_operands = 0 : i64, tpu.core_type = #tpu.core_type<tc>, window_params = [{transform_indices = @transform_0, window_bounds = array<i64: 1, 128, 8>}, {transform_indices = @transform_1, window_bounds = array<i64: 1, 1, 2, 8>}, {pipeline_mode = #tpu.pipeline_mode<synchronous>, transform_indices = @transform_2, window_bounds = array<i64: 24, 128>}, {transform_indices = @transform_3, window_bounds = array<i64: 1, 2, 128>}]} {
    %c0_i32 = arith.constant 0 : i32
    %0 = arith.cmpi eq, %arg1, %c0_i32 : i32
    %1 = arith.extui %0 : i1 to i32
    %c0_i32_0 = arith.constant 0 : i32
    %2 = arith.cmpi ne, %1, %c0_i32_0 : i32
    scf.if %2 {
      %cst_13 = arith.constant 0.000000e+00 : f32
      %21 = vector.broadcast %cst_13 : f32 to vector<2x128xf32>
      %c0_14 = arith.constant 0 : index
      %c0_15 = arith.constant 0 : index
      %c0_16 = arith.constant 0 : index
      %22 = vector.load %arg5[%c0_14, %c0_15, %c0_16] : memref<1x2x128xf32, #tpu.memory_space<vmem>>, vector<1x2x128xf32>
      %23 = vector.shape_cast %22 : vector<1x2x128xf32> to vector<2x128xf32>
      %24 = vector.shape_cast %21 : vector<2x128xf32> to vector<1x2x128xf32>
      tpu.vector_store %arg5[%c0_14, %c0_15, %c0_16], %24 {strides = array<i32>} : memref<1x2x128xf32, #tpu.memory_space<vmem>>, vector<1x2x128xf32>,
    } else {
    }
    %c0 = arith.constant 0 : index
    %c0_1 = arith.constant 0 : index
    %c0_2 = arith.constant 0 : index
    %3 = vector.load %arg2[%c0, %c0_1, %c0_2] : memref<1x128x8xbf16, #tpu.memory_space<vmem>>, vector<1x128x8xbf16>
    %4 = vector.shape_cast %3 : vector<1x128x8xbf16> to vector<128x8xbf16>
    %c0_3 = arith.constant 0 : index
    %c0_4 = arith.constant 0 : index
    %c0_5 = arith.constant 0 : index
    %c0_6 = arith.constant 0 : index
    %5 = vector.load %arg3[%c0_3, %c0_4, %c0_5, %c0_6] : memref<1x1x2x8xbf16, #tpu.memory_space<vmem>>, vector<1x1x2x8xbf16>
    %6 = vector.shape_cast %5 : vector<1x1x2x8xbf16> to vector<2x8xbf16>
    %7 = tpu.concatenate %4, %6 in 0 : vector<128x8xbf16>, vector<2x8xbf16> -> vector<130x8xbf16>
    %8 = arith.extf %7 : vector<130x8xbf16> to vector<130x8xf32>
    %9 = vector.extract_strided_slice %8 {offsets = [0, 0], sizes = [128, 8], strides = [1, 1]} : vector<130x8xf32> to vector<128x8xf32>
    %10 = vector.extract_strided_slice %8 {offsets = [1, 0], sizes = [128, 8], strides = [1, 1]} : vector<130x8xf32> to vector<128x8xf32>
    %11 = vector.extract_strided_slice %8 {offsets = [2, 0], sizes = [128, 8], strides = [1, 1]} : vector<130x8xf32> to vector<128x8xf32>
    %12 = tpu.concatenate %9, %10, %11 in 1 : vector<128x8xf32>, vector<128x8xf32>, vector<128x8xf32> -> vector<128x24xf32>
    %c0_7 = arith.constant 0 : index
    %c0_8 = arith.constant 0 : index
    %13 = vector.load %arg4[%c0_7, %c0_8] : memref<24x128xf32, #tpu.memory_space<vmem>>, vector<24x128xf32>
    %cst = arith.constant dense<0.000000e+00> : vector<128x128xf32>
    %14 = tpu.matmul %12, %13, %cst {dimension_numbers = #tpu.dot_dimension_numbers<[1], [0], [0], [1], [0, 0, 1, 1], [], []>} : vector<128x24xf32>, vector<24x128xf32>, vector<128x128xf32> -> vector<128x128xf32>
    %c0_i32_9 = arith.constant 0 : i32
    %15 = arith.cmpi slt, %arg1, %c0_i32_9 : i32
    %16 = arith.extui %15 : i1 to i32
    %c0_i32_10 = arith.constant 0 : i32
    %17 = arith.cmpi ne, %16, %c0_i32_10 : i32
    scf.if %17 {
      %c0_13 = arith.constant 0 : index
      %c0_14 = arith.constant 0 : index
      %c0_15 = arith.constant 0 : index
      %21 = vector.load %arg5[%c0_13, %c0_14, %c0_15] : memref<1x2x128xf32, #tpu.memory_space<vmem>>, vector<1x2x128xf32>
      %22 = vector.shape_cast %21 : vector<1x2x128xf32> to vector<2x128xf32>
      %cst_16 = arith.constant dense<0.000000e+00> : vector<128xf32>
      %23 = vector.multi_reduction <add>, %14, %cst_16 [0] : vector<128x128xf32> to vector<128xf32>
      %24 = vector.shape_cast %23 : vector<128xf32> to vector<1x128xf32>
      %25 = arith.mulf %14, %14 : vector<128x128xf32>
      %cst_17 = arith.constant dense<0.000000e+00> : vector<128xf32>
      %26 = vector.multi_reduction <add>, %25, %cst_17 [0] : vector<128x128xf32> to vector<128xf32>
      %27 = vector.shape_cast %26 : vector<128xf32> to vector<1x128xf32>
      %28 = tpu.concatenate %24, %27 in 0 : vector<1x128xf32>, vector<1x128xf32> -> vector<2x128xf32>
      %29 = arith.addf %22, %28 : vector<2x128xf32>
      %c0_18 = arith.constant 0 : index
      %c0_19 = arith.constant 0 : index
      %c0_20 = arith.constant 0 : index
      %30 = vector.load %arg5[%c0_18, %c0_19, %c0_20] : memref<1x2x128xf32, #tpu.memory_space<vmem>>, vector<1x2x128xf32>
      %31 = vector.shape_cast %30 : vector<1x2x128xf32> to vector<2x128xf32>
      %32 = vector.shape_cast %29 : vector<2x128xf32> to vector<1x2x128xf32>
      tpu.vector_store %arg5[%c0_18, %c0_19, %c0_20], %32 {strides = array<i32>} : memref<1x2x128xf32, #tpu.memory_space<vmem>>, vector<1x2x128xf32>,
    } else {
    }
    %c0_i32_11 = arith.constant 0 : i32
    %18 = arith.cmpi eq, %arg1, %c0_i32_11 : i32
    %19 = arith.extui %18 : i1 to i32
    %c0_i32_12 = arith.constant 0 : i32
    %20 = arith.cmpi ne, %19, %c0_i32_12 : i32
    scf.if %20 {
      %21 = tpu.iota {dimensions = array<i32: 0>} : vector<128x1xi32>
      %c128_i32 = arith.constant 128 : i32
      %22 = arith.muli %arg1, %c128_i32 : i32
      %23 = vector.broadcast %22 : i32 to vector<128x1xi32>
      %24 = arith.addi %23, %21 : vector<128x1xi32>
      %c16_i32 = arith.constant 16 : i32
      %25 = vector.broadcast %c16_i32 : i32 to vector<128x1xi32>
      %26 = arith.cmpi slt, %24, %25 : vector<128x1xi32>
      %cst_13 = arith.constant 0.000000e+00 : f32
      %27 = vector.shape_cast %26 : vector<128x1xi1> to vector<128x1xi1>
      %28 = vector.broadcast %27 : vector<128x1xi1> to vector<128x128xi1>
      %29 = vector.broadcast %cst_13 : f32 to vector<128x128xf32>
      %30 = arith.select %28, %14, %29 : vector<128x128xi1>, vector<128x128xf32>
      %c0_14 = arith.constant 0 : index
      %c0_15 = arith.constant 0 : index
      %c0_16 = arith.constant 0 : index
      %31 = vector.load %arg5[%c0_14, %c0_15, %c0_16] : memref<1x2x128xf32, #tpu.memory_space<vmem>>, vector<1x2x128xf32>
      %32 = vector.shape_cast %31 : vector<1x2x128xf32> to vector<2x128xf32>
      %cst_17 = arith.constant dense<0.000000e+00> : vector<128xf32>
      %33 = vector.multi_reduction <add>, %30, %cst_17 [0] : vector<128x128xf32> to vector<128xf32>
      %34 = vector.shape_cast %33 : vector<128xf32> to vector<1x128xf32>
      %35 = arith.mulf %30, %30 : vector<128x128xf32>
      %cst_18 = arith.constant dense<0.000000e+00> : vector<128xf32>
      %36 = vector.multi_reduction <add>, %35, %cst_18 [0] : vector<128x128xf32> to vector<128xf32>
      %37 = vector.shape_cast %36 : vector<128xf32> to vector<1x128xf32>
      %38 = tpu.concatenate %34, %37 in 0 : vector<1x128xf32>, vector<1x128xf32> -> vector<2x128xf32>
      %39 = arith.addf %32, %38 : vector<2x128xf32>
      %c0_19 = arith.constant 0 : index
      %c0_20 = arith.constant 0 : index
      %c0_21 = arith.constant 0 : index
      %40 = vector.load %arg5[%c0_19, %c0_20, %c0_21] : memref<1x2x128xf32, #tpu.memory_space<vmem>>, vector<1x2x128xf32>
      %41 = vector.shape_cast %40 : vector<1x2x128xf32> to vector<2x128xf32>
      %42 = vector.shape_cast %39 : vector<2x128xf32> to vector<1x2x128xf32>
      tpu.vector_store %arg5[%c0_19, %c0_20, %c0_21], %42 {strides = array<i32>} : memref<1x2x128xf32, #tpu.memory_space<vmem>>, vector<1x2x128xf32>,
    } else {
    }
    return
  }
  func.func @transform_0(%arg0: i32, %arg1: i32) -> (i32, i32, i32) {
    %c0_i32 = arith.constant 0 : i32
    %c0_i32_0 = arith.constant 0 : i32
    return %arg0, %arg1, %c0_i32 : i32, i32, i32
  }
  func.func @transform_1(%arg0: i32, %arg1: i32) -> (i32, i32, i32, i32) {
    %c0_i32 = arith.constant 0 : i32
    %c0_i32_0 = arith.constant 0 : i32
    %c0_i32_1 = arith.constant 0 : i32
    return %arg0, %arg1, %c0_i32, %c0_i32_0 : i32, i32, i32, i32
  }
  func.func @transform_2(%arg0: i32, %arg1: i32) -> (i32, i32) {
    %c0_i32 = arith.constant 0 : i32
    %c0_i32_0 = arith.constant 0 : i32
    %c0_i32_1 = arith.constant 0 : i32
    return %c0_i32, %c0_i32_0 : i32, i32
  }
  func.func @transform_3(%arg0: i32, %arg1: i32) -> (i32, i32, i32) {
    %c0_i32 = arith.constant 0 : i32
    %c0_i32_0 = arith.constant 0 : i32
    %c0_i32_1 = arith.constant 0 : i32
    return %arg0, %c0_i32, %c0_i32_0 : i32, i32, i32
  }
}

module attributes {stable_mosaic.version = 11 : i64} {
  func.func @_apply_kernel(%arg0: i32, %arg1: i32, %arg2: memref<1x128x8xbf16, #tpu.memory_space<vmem>>, %arg3: memref<1x1x2x8xbf16, #tpu.memory_space<vmem>>, %arg4: memref<24x128xf32, #tpu.memory_space<vmem>>, %arg5: memref<2x128xf32, #tpu.memory_space<vmem>>, %arg6: memref<1xf32, #tpu.memory_space<smem>>, %arg7: memref<1x8x128xf32, #tpu.memory_space<vmem>>) attributes {dimension_semantics = [#tpu.dimension_semantics<parallel>, #tpu.dimension_semantics<parallel>], iteration_bounds = array<i64: 2, 1>, scalar_prefetch = 0 : i64, scratch_operands = 0 : i64, tpu.core_type = #tpu.core_type<tc>, window_params = [{transform_indices = @transform_0, window_bounds = array<i64: 1, 128, 8>}, {transform_indices = @transform_1, window_bounds = array<i64: 1, 1, 2, 8>}, {pipeline_mode = #tpu.pipeline_mode<synchronous>, transform_indices = @transform_2, window_bounds = array<i64: 24, 128>}, {pipeline_mode = #tpu.pipeline_mode<synchronous>, transform_indices = @transform_3, window_bounds = array<i64: 2, 128>}, {transform_indices = @transform_4, window_bounds = array<i64: 1>}, {transform_indices = @transform_5, window_bounds = array<i64: 1, 8, 128>}]} {
    %c0 = arith.constant 0 : index
    %c0_0 = arith.constant 0 : index
    %c0_1 = arith.constant 0 : index
    %0 = vector.load %arg2[%c0, %c0_0, %c0_1] : memref<1x128x8xbf16, #tpu.memory_space<vmem>>, vector<1x128x8xbf16>
    %1 = vector.shape_cast %0 : vector<1x128x8xbf16> to vector<128x8xbf16>
    %c0_2 = arith.constant 0 : index
    %c0_3 = arith.constant 0 : index
    %c0_4 = arith.constant 0 : index
    %c0_5 = arith.constant 0 : index
    %2 = vector.load %arg3[%c0_2, %c0_3, %c0_4, %c0_5] : memref<1x1x2x8xbf16, #tpu.memory_space<vmem>>, vector<1x1x2x8xbf16>
    %3 = vector.shape_cast %2 : vector<1x1x2x8xbf16> to vector<2x8xbf16>
    %4 = tpu.concatenate %1, %3 in 0 : vector<128x8xbf16>, vector<2x8xbf16> -> vector<130x8xbf16>
    %5 = arith.extf %4 : vector<130x8xbf16> to vector<130x8xf32>
    %6 = vector.extract_strided_slice %5 {offsets = [0, 0], sizes = [128, 8], strides = [1, 1]} : vector<130x8xf32> to vector<128x8xf32>
    %7 = vector.extract_strided_slice %5 {offsets = [1, 0], sizes = [128, 8], strides = [1, 1]} : vector<130x8xf32> to vector<128x8xf32>
    %8 = vector.extract_strided_slice %5 {offsets = [2, 0], sizes = [128, 8], strides = [1, 1]} : vector<130x8xf32> to vector<128x8xf32>
    %9 = tpu.concatenate %6, %7, %8 in 1 : vector<128x8xf32>, vector<128x8xf32>, vector<128x8xf32> -> vector<128x24xf32>
    %c0_6 = arith.constant 0 : index
    %c0_7 = arith.constant 0 : index
    %10 = vector.load %arg4[%c0_6, %c0_7] : memref<24x128xf32, #tpu.memory_space<vmem>>, vector<24x128xf32>
    %cst = arith.constant dense<0.000000e+00> : vector<128x128xf32>
    %11 = tpu.matmul %9, %10, %cst {dimension_numbers = #tpu.dot_dimension_numbers<[1], [0], [0], [1], [0, 0, 1, 1], [], []>} : vector<128x24xf32>, vector<24x128xf32>, vector<128x128xf32> -> vector<128x128xf32>
    %c0_8 = arith.constant 0 : index
    %c0_9 = arith.constant 0 : index
    %12 = vector.load %arg5[%c0_8, %c0_9] : memref<2x128xf32, #tpu.memory_space<vmem>>, vector<2x128xf32>
    %13 = vector.extract_strided_slice %12 {offsets = [0, 0], sizes = [1, 128], strides = [1, 1]} : vector<2x128xf32> to vector<1x128xf32>
    %14 = vector.broadcast %13 : vector<1x128xf32> to vector<128x128xf32>
    %15 = arith.mulf %11, %14 : vector<128x128xf32>
    %16 = vector.extract_strided_slice %12 {offsets = [1, 0], sizes = [1, 128], strides = [1, 1]} : vector<2x128xf32> to vector<1x128xf32>
    %17 = vector.broadcast %16 : vector<1x128xf32> to vector<128x128xf32>
    %18 = arith.addf %15, %17 : vector<128x128xf32>
    %c0_10 = arith.constant 0 : index
    %19 = memref.load %arg6[%c0_10] : memref<1xf32, #tpu.memory_space<smem>>
    %cst_11 = arith.constant 0.000000e+00 : f32
    %20 = vector.broadcast %cst_11 : f32 to vector<128x128xf32>
    %21 = arith.cmpf oge, %18, %20 : vector<128x128xf32>
    %22 = vector.broadcast %19 : f32 to vector<128x128xf32>
    %23 = arith.mulf %22, %18 : vector<128x128xf32>
    %24 = arith.select %21, %18, %23 : vector<128x128xi1>, vector<128x128xf32>
    %25 = tpu.transpose %24, [1, 0] : vector<128x128xf32> -> vector<128x128xf32>
    %26 = vector.extract_strided_slice %25 {offsets = [0, 0], sizes = [8, 128], strides = [1, 1]} : vector<128x128xf32> to vector<8x128xf32>
    %c0_12 = arith.constant 0 : index
    %c0_13 = arith.constant 0 : index
    %c0_14 = arith.constant 0 : index
    %27 = vector.load %arg7[%c0_12, %c0_13, %c0_14] : memref<1x8x128xf32, #tpu.memory_space<vmem>>, vector<1x8x128xf32>
    %28 = vector.shape_cast %27 : vector<1x8x128xf32> to vector<8x128xf32>
    %29 = vector.shape_cast %26 : vector<8x128xf32> to vector<1x8x128xf32>
    tpu.vector_store %arg7[%c0_12, %c0_13, %c0_14], %29 {strides = array<i32>} : memref<1x8x128xf32, #tpu.memory_space<vmem>>, vector<1x8x128xf32>,
    return
  }
  func.func @transform_0(%arg0: i32, %arg1: i32) -> (i32, i32, i32) {
    %c0_i32 = arith.constant 0 : i32
    %c0_i32_0 = arith.constant 0 : i32
    return %arg0, %arg1, %c0_i32 : i32, i32, i32
  }
  func.func @transform_1(%arg0: i32, %arg1: i32) -> (i32, i32, i32, i32) {
    %c0_i32 = arith.constant 0 : i32
    %c0_i32_0 = arith.constant 0 : i32
    %c0_i32_1 = arith.constant 0 : i32
    return %arg0, %arg1, %c0_i32, %c0_i32_0 : i32, i32, i32, i32
  }
  func.func @transform_2(%arg0: i32, %arg1: i32) -> (i32, i32) {
    %c0_i32 = arith.constant 0 : i32
    %c0_i32_0 = arith.constant 0 : i32
    %c0_i32_1 = arith.constant 0 : i32
    return %c0_i32, %c0_i32_0 : i32, i32
  }
  func.func @transform_3(%arg0: i32, %arg1: i32) -> (i32, i32) {
    %c0_i32 = arith.constant 0 : i32
    %c0_i32_0 = arith.constant 0 : i32
    %c0_i32_1 = arith.constant 0 : i32
    return %c0_i32, %c0_i32_0 : i32, i32
  }
  func.func @transform_4(%arg0: i32, %arg1: i32) -> i32 {
    %c0_i32 = arith.constant 0 : i32
    %c0_i32_0 = arith.constant 0 : i32
    return %c0_i32 : i32
  }
  func.func @transform_5(%arg0: i32, %arg1: i32) -> (i32, i32, i32) {
    %c0_i32 = arith.constant 0 : i32
    %c0_i32_0 = arith.constant 0 : i32
    return %arg0, %c0_i32, %arg1 : i32, i32, i32
  }
}

</mosaic_0001>

<bundles_post_ra>
// kernel: conv_block_forward.2
= control target key start
LH: loop header
LB: loop body
LE: loop exit
PB: predicated region body
PF: predicated region fallthrough
CT: control target
= control target key end

     0   :  { %s1305_s12 = smov 0   ;;  %s1307_s13 = smov 0   ;;  %s1554_s0 = inlined_call_operand.vmem [shape: bf16[2,130,8], index: 0, kind: input, shape index: {}]   ;;  %s1555_s1 = inlined_call_operand.vmem [shape: bf16[2,1,2,8], index: 1, kind: input, shape index: {}]   ;;  %s1556_s2 = inlined_call_operand.vmem [shape: f32[24,128], index: 2, kind: input, shape index: {}]   ;;  %s1557_s3 = inlined_call_operand.vmem [shape: f32[2,2,128], index: 3, kind: output, shape index: {}]  }
   0x1   :  { %s1309_s14 = smov 0  }
   0x2 LB: > { %s25_s15 = sadd.s32 1, %s1276_s13  ;;  %p1056_p0 = scmp.ge.s32.totalorder %s1280_s14, 1  ;;  %s1280_s14 = sphi %s1309_s14, %s13_s14   ;;  %s1276_s13 = sphi %s1307_s13, %s1559_s13   ;;  %s1272_s12 = sphi %s1305_s12, %s1558_s12  }
   0x3   : > { %p27_p1 = scmp.ge.s32.totalorder %s25_s15, 2  ;;  %p177_p2 = scmp.lt.s32.totalorder %s1280_s14, 3 }
   0x5   : > { %s1561_s15 = smov (%p27_p1, %s25_s15), 0  ;;  %p178_p3 = pnand %p1056_p0, %p177_p2 }
   0x6   : > { %p219_p4 = scmp.lt.s32.totalorder (!%p178_p3), %s1272_s12, 1  ;;  %v544_v0 = vld [vmem:[%s1556_s2] sm:$0xff] (!%p178_p3)  ;;  %v545_v1 = vld [vmem:[%s1556_s2 + $0x8] sm:$0xff] (!%p178_p3)  ;;  %vm346_vm0 = vcmask (!%p178_p3), 1046528   ;;  %vm428_vm1 = vcmask (!%p178_p3), 1045504   ;;  %v546_v29 = vld [vmem:[%s1556_s2 + $0x10] sm:$0xff] (!%p178_p3) }
   0x7   : > { %181 = sbr.rel (%p178_p3) target bundleno = 388 (0x184), region = 32  ;;  %v1134_v2 = vpack.c.bf16 (!%p178_p3), %v545_v1, %v544_v0  ;;  %s1282_s29 = smov (!%p178_p3), 8   ;;  %vm510_vm2 = vcmask (!%p178_p3), 64512   ;;  %vm527_vm3 = vcmask (!%p178_p3), 130048   ;;  %vm547_vm4 = vcmask (!%p178_p3), 195584  }
   0x8   : > { %s1283_s30 = smov (!%p178_p3), 16   ;;  %vm969_vm5 = vcmask (!%p178_p3), 1040384  }
   0x9   : > { %1135 = vmatprep.subr.bf16.mxu0 (!%p178_p3), %v1134_v2  ;;  %1138 = vmatprep.subr.bf16.mxu1 (!%p178_p3), %v1134_v2 }
   0xa   : > { %1137 = vmatpush3.bf16.msra.mxu0 (!%p178_p3), %v1134_v2  ;;  %1140 = vmatpush3.bf16.msra.mxu1 (!%p178_p3), %v1134_v2 }
   0xb   : > { %1108 = vmatprep.subr.mxu0 (!%p178_p3), %v546_v29  ;;  %1139 = vmatprep.subr.mxu1 (!%p178_p3), %v546_v29 }
   0xe   : > { %s1563_s12 = smov (!%p219_p4, %s1272_s12), 1  ;;  %1109 = vmatpush3.msra.mxu0 %v546_v29  ;;  %1141 = vmatpush3.msra.mxu1 %v546_v29 }
   0xf   : > { %s1142_s16 = smul.u32 68, %s1563_s12  ;;  %s237_s28 = scalar_lea.vmem %s1555_s1, %s1563_s12 }
  0x10   : > { %v263_v46 = vld [vmem:[%s237_s28] sm:$0x1]  ;;  %s1058_s4 = sshll.u32 %s1563_s12, 1 }
  0x11   : > { %s1329_s19 = scalar_lea.vmem %s1554_s0, %s1142_s16  ;;  %v328_v59 = vunpack.c.l.bf16 %v263_v46  ;;  %s1540_s7 = scalar_lea.vmem %s1557_s3, %s1058_s4 }
  0x12   : > { %v1250_v3 = vld [vmem:[%s1329_s19 + $0x20] sm:$0xff]   ;;  %v1251_v4 = vld [vmem:[%s1329_s19 + $0x28] sm:$0xff]   ;;  %v1254_v19 = vld [vmem:[%s1329_s19 + $0x10] sm:$0xff]  }
  0x13   : > { %v1339_v5 = vunpack.c.l.bf16 %v1250_v3  ;;  %v1341_v6 = vunpack.c.h.bf16 %v1250_v3  ;;  %v1343_v7 = vunpack.c.l.bf16 %v1251_v4  ;;  %v1252_v8 = vld [vmem:[%s1329_s19] sm:$0xff]   ;;  %v1253_v9 = vld [vmem:[%s1329_s19 + $0x8] sm:$0xff]   ;;  %v1347_v10 = vunpack.c.h.bf16 %v1251_v4  ;;  %v1255_v28 = vld [vmem:[%s1329_s19 + $0x30] sm:$0xff]  }
  0x14   : > { %v1352_v14 = vunpack.c.l.bf16 %v1252_v8  ;;  %v1354_v15 = vunpack.c.h.bf16 %v1252_v8  ;;  %v1356_v16 = vunpack.c.l.bf16 %v1253_v9  ;;  %v1387_v37 = vunpack.c.h.bf16 %v1253_v9  ;;  %v1256_v51 = vld [vmem:[%s1329_s19 + $0x18] sm:$0xff]  }
  0x15   : > { %v362_v11 = vrot.slane %v1339_v5, 1  ;;  %v364_v12 = vrot.slane %v1341_v6, 1  ;;  %v366_v13 = vrot.slane %v1343_v7, 1  ;;  %v444_v17 = vrot.slane %v1339_v5, 2  ;;  %v1257_v56 = vld [vmem:[%s1329_s19 + $0x38] sm:$0xff]  }
  0x16   : > { %v446_v18 = vrot.slane %v1341_v6, 2  ;;  %v347_v22 = vrot.slane %v1352_v14, 1  ;;  %v448_v23 = vrot.slane %v1343_v7, 2  ;;  %v348_v25 = vrot.slane %v1354_v15, 1 }
  0x17   : > { %v365_v20 = vsel %vm346_vm0, %v362_v11, %v364_v12  ;;  %v367_v21 = vsel %vm346_vm0, %v364_v12, %v366_v13  ;;  %v350_v26 = vrot.slane %v1356_v16, 1  ;;  %v429_v31 = vrot.slane %v1352_v14, 2 }
  0x18   : > { %v1180_v24 = vpack.i.bf16 %v367_v21, %v365_v20  ;;  %v447_v27 = vsel %vm428_vm1, %v444_v17, %v446_v18  ;;  %v449_v30 = vsel %vm428_vm1, %v446_v18, %v448_v23  ;;  %v430_v32 = vrot.slane %v1354_v15, 2 }
  0x19   : > { %v432_v33 = vrot.slane %v1356_v16, 2  ;;  %v349_v34 = vsel %vm346_vm0, %v347_v22, %v348_v25  ;;  %v351_v35 = vsel %vm346_vm0, %v348_v25, %v350_v26  ;;  %v1185_v36 = vpack.i.bf16 %v449_v30, %v447_v27 }
  0x1a   : > { %1181 = vrot.lane.b32.xlu1 %v1180_v24, %s1282_s29  ;;  %v1170_v38 = vpack.i.bf16 %v351_v35, %v349_v34  ;;  %v431_v39 = vsel %vm428_vm1, %v429_v31, %v430_v32  ;;  %v1391_v41 = vunpack.c.l.bf16 %v1254_v19  ;;  %v1393_v43 = vunpack.c.l.bf16 %v1255_v28 }
  0x1b   : > { %v433_v40 = vsel %vm428_vm1, %v430_v32, %v432_v33  ;;  %v352_v44 = vrot.slane %v1387_v37, 1  ;;  %v368_v45 = vrot.slane %v1347_v10, 1  ;;  %v434_v48 = vrot.slane %v1387_v37, 2 }
  0x1c   : > { %v1175_v42 = vpack.i.bf16 %v433_v40, %v431_v39  ;;  %1171 = vrot.lane.b32.xlu0 %v1170_v38, %s1282_s29  ;;  %v354_v47 = vrot.slane %v1391_v41, 1  ;;  %v436_v49 = vrot.slane %v1391_v41, 2  ;;  %v450_v50 = vrot.slane %v1347_v10, 2 }
  0x1d   : > { %v370_v52 = vrot.slane %v1393_v43, 1  ;;  %v353_v53 = vsel %vm346_vm0, %v350_v26, %v352_v44  ;;  %v369_v54 = vsel %vm346_vm0, %v366_v13, %v368_v45  ;;  %v452_v55 = vrot.slane %v1393_v43, 2 }
  0x1e   : > { %1186 = vrot.lane.b32.xlu1 %v1185_v36, %s1283_s30  ;;  %v355_v57 = vsel %vm346_vm0, %v352_v44, %v354_v47  ;;  %v437_v58 = vsel %vm428_vm1, %v434_v48, %v436_v49  ;;  %v1190_v61 = vpack.i.bf16 %v369_v54, %v353_v53  ;;  %v1413_v63 = vunpack.c.h.bf16 %v1254_v19 }
  0x1f   : > { %v371_v60 = vsel %vm346_vm0, %v368_v45, %v370_v52  ;;  %v453_v62 = vsel %vm428_vm1, %v450_v50, %v452_v55  ;;  %v435_v1 = vsel %vm428_vm1, %v432_v33, %v434_v48  ;;  %v451_v2 = vsel %vm428_vm1, %v448_v23, %v450_v50 }
  0x20   : > { %1176 = vrot.lane.b32.xlu0 %v1175_v42, %s1283_s30  ;;  %v1195_v0 = vpack.i.bf16 %v371_v60, %v355_v57  ;;  %v1418_v3 = vunpack.c.l.bf16 %v1256_v51  ;;  %v1205_v4 = vpack.i.bf16 %v453_v62, %v437_v58  ;;  %v1420_v8 = vunpack.c.h.bf16 %v1255_v28 }
  0x21   : > { %v1422_v9 = vunpack.c.l.bf16 %v1257_v56  ;;  %v356_v12 = vrot.slane %v1413_v63, 1  ;;  %v438_v18 = vrot.slane %v1413_v63, 2  ;;  %v1429_v20 = vunpack.c.h.bf16 %v1256_v51 }
  0x22   : > { %1196 = vrot.lane.b32.xlu1 %v1195_v0, %s1282_s29  ;;  %v358_v13 = vrot.slane %v1418_v3, 1  ;;  %v440_v19 = vrot.slane %v1418_v3, 2  ;;  %v372_v21 = vrot.slane %v1420_v8, 1  ;;  %v454_v23 = vrot.slane %v1420_v8, 2 }
  0x23   : > { %v374_v22 = vrot.slane %v1422_v9, 1  ;;  %v1434_v24 = vunpack.c.h.bf16 %v1257_v56  ;;  %v1200_v25 = vpack.i.bf16 %v451_v2, %v435_v1  ;;  %v456_v27 = vrot.slane %v1422_v9, 2 }
  0x24   : > { %1191 = vrot.lane.b32.xlu0 %v1190_v61, %s1282_s29  ;;  %v359_v26 = vsel %vm346_vm0, %v356_v12, %v358_v13  ;;  %v357_v29 = vsel %vm346_vm0, %v354_v47, %v356_v12  ;;  %v373_v30 = vsel %vm346_vm0, %v370_v52, %v372_v21  ;;  %v378_v32 = vrot.slane %v328_v59, 1 }
  0x25   : > { %v375_v28 = vsel %vm346_vm0, %v372_v21, %v374_v22  ;;  %v441_v33 = vsel %vm428_vm1, %v438_v18, %v440_v19  ;;  %v457_v34 = vsel %vm428_vm1, %v454_v23, %v456_v27  ;;  %v360_v35 = vrot.slane %v1429_v20, 1 }
  0x26   : > { %1206 = vrot.lane.b32.xlu1 %v1205_v4, %s1283_s30  ;;  %v1215_v31 = vpack.i.bf16 %v375_v28, %v359_v26  ;;  %v376_v36 = vrot.slane %v1434_v24, 1  ;;  %v1210_v38 = vpack.i.bf16 %v373_v30, %v357_v29  ;;  %v439_v39 = vsel %vm428_vm1, %v436_v49, %v438_v18 }
  0x27   : > { %v455_v40 = vsel %vm428_vm1, %v452_v55, %v454_v23  ;;  %v1225_v42 = vpack.i.bf16 %v457_v34, %v441_v33  ;;  %v460_v44 = vrot.slane %v328_v59, 2  ;;  %v363_v45 = vsel %vm346_vm0, %v360_v35, %v362_v11 }
  0x28   : > { %1201 = vrot.lane.b32.xlu0 %v1200_v25, %s1283_s30  ;;  %v379_v46 = vsel %vm346_vm0, %v376_v36, %v378_v32  ;;  %v442_v47 = vrot.slane %v1429_v20, 2  ;;  %v458_v48 = vrot.slane %v1434_v24, 2  ;;  %v1220_v50 = vpack.i.bf16 %v455_v40, %v439_v39 }
  0x29   : > { %v361_v49 = vsel %vm346_vm0, %v358_v13, %v360_v35  ;;  %v377_v51 = vsel %vm346_vm0, %v374_v22, %v376_v36  ;;  %v1235_v52 = vpack.i.bf16 %v379_v46, %v363_v45 }
  0x2a   : > { %1216 = vrot.lane.b32.xlu1 %v1215_v31, %s1282_s29  ;;  %v445_v11 = vsel %vm428_vm1, %v442_v47, %v444_v17  ;;  %v461_v53 = vsel %vm428_vm1, %v458_v48, %v460_v44  ;;  %v1230_v54 = vpack.i.bf16 %v377_v51, %v361_v49  ;;  %v443_v55 = vsel %vm428_vm1, %v440_v19, %v442_v47 }
  0x2b   : > { %v459_v56 = vsel %vm428_vm1, %v456_v27, %v458_v48  ;;  %v1245_v57 = vpack.i.bf16 %v461_v53, %v445_v11 }
  0x2c   : > { %1211 = vrot.lane.b32.xlu0 %v1210_v38, %s1282_s29  ;;  %v1240_v58 = vpack.i.bf16 %v459_v56, %v443_v55 }
  0x2e   : > { %1226 = vrot.lane.b32.xlu1 %v1225_v42, %s1283_s30 }
  0x30   : > { %1221 = vrot.lane.b32.xlu0 %v1220_v50, %s1283_s30 }
  0x32   : > { %1236 = vrot.lane.b32.xlu1 %v1235_v52, %s1282_s29 }
  0x34   : > { %1231 = vrot.lane.b32.xlu0 %v1230_v54, %s1282_s29 }
  0x36   : > { %1246 = vrot.lane.b32.xlu1 %v1245_v57, %s1283_s30 }
  0x38   : > { %1241 = vrot.lane.b32.xlu0 %v1240_v58, %s1283_s30 }
  0x8c   : > { %v1182_v17 = vpop.permute.xlu1 %1181 }
  0x8d   : > { %v1184_v59 = vunpack.i.h.bf16 %v1182_v17  ;;  %v1183_v60 = vunpack.i.l.bf16 %v1182_v17 }
  0x8e   : > { %v1172_v61 = vpop.permute.xlu0 %1171 }
  0x8f   : > { %v1174_v0 = vunpack.i.h.bf16 %v1172_v61  ;;  %v1173_v1 = vunpack.i.l.bf16 %v1172_v61  ;;  %v519_v12 = vsel %vm510_vm2, %v1339_v5, %v1183_v60  ;;  %v520_v13 = vsel %vm510_vm2, %v1341_v6, %v1184_v59 }
  0x90   : > { %v1187_v62 = vpop.permute.xlu1 %1186 }
  0x91   : > { %v1189_v2 = vunpack.i.h.bf16 %v1187_v62  ;;  %v1188_v4 = vunpack.i.l.bf16 %v1187_v62  ;;  %v511_v26 = vsel %vm510_vm2, %v1352_v14, %v1173_v1  ;;  %v512_v27 = vsel %vm510_vm2, %v1354_v15, %v1174_v0 }
  0x92   : > { %v1177_v18 = vpop.permute.xlu0 %1176 }
  0x93   : > { %v536_v19 = vsel %vm527_vm3, %v519_v12, %v1188_v4  ;;  %v537_v21 = vsel %vm527_vm3, %v520_v13, %v1189_v2  ;;  %v1179_v22 = vunpack.i.h.bf16 %v1177_v18  ;;  %v1178_v23 = vunpack.i.l.bf16 %v1177_v18 }
  0x94   : > { %1122 = vmatprep.mubr.msk.f32.mxu1 %vm547_vm4, %v536_v19  ;;  %v1197_v25 = vpop.permute.xlu1 %1196 }
  0x95   : > { %1123 = vmatmul.mubr.msk.f32.vlgmr.msra.gmra.mrb[0].mxu1 %vm547_vm4, %v537_v21  ;;  %v528_v5 = vsel %vm527_vm3, %v511_v26, %v1178_v23  ;;  %v529_v6 = vsel %vm527_vm3, %v512_v27, %v1179_v22  ;;  %v1199_v29 = vunpack.i.h.bf16 %v1197_v25  ;;  %v1198_v30 = vunpack.i.l.bf16 %v1197_v25 }
  0x96   : > { %v1192_v28 = vpop.permute.xlu0 %1191  ;;  %1110 = vmatprep.mubr.msk.f32.mxu0 %vm547_vm4, %v528_v5 }
  0x97   : > { %1111 = vmatmul.mubr.msk.f32.vlgmr.msra.gmra.mrb[0].mxu0 %vm547_vm4, %v529_v6  ;;  %v1194_v31 = vunpack.i.h.bf16 %v1192_v28  ;;  %v1193_v32 = vunpack.i.l.bf16 %v1192_v28  ;;  %v514_v38 = vsel %vm510_vm2, %v1387_v37, %v1198_v30  ;;  %v522_v39 = vsel %vm510_vm2, %v1347_v10, %v1199_v29 }
  0x98   : > { %v1207_v33 = vpop.permute.xlu1 %1206 }
  0x99   : > { %v1209_v14 = vunpack.i.h.bf16 %v1207_v33  ;;  %v1208_v34 = vunpack.i.l.bf16 %v1207_v33  ;;  %v513_v42 = vsel %vm510_vm2, %v1356_v16, %v1193_v32  ;;  %v521_v44 = vsel %vm510_vm2, %v1343_v7, %v1194_v31 }
  0x9a   : > { %v1202_v35 = vpop.permute.xlu0 %1201 }
  0x9b   : > { %v1204_v15 = vunpack.i.h.bf16 %v1202_v35  ;;  %v1203_v36 = vunpack.i.l.bf16 %v1202_v35  ;;  %v531_v45 = vsel %vm527_vm3, %v514_v38, %v1208_v34  ;;  %v539_v46 = vsel %vm527_vm3, %v522_v39, %v1209_v14 }
  0x9c   : > { %v1217_v40 = vpop.permute.xlu1 %1216 }
  0x9d   : > { %v530_v47 = vsel %vm527_vm3, %v513_v42, %v1203_v36  ;;  %v538_v48 = vsel %vm527_vm3, %v521_v44, %v1204_v15  ;;  %v1219_v10 = vunpack.i.h.bf16 %v1217_v40  ;;  %v1218_v37 = vunpack.i.l.bf16 %v1217_v40 }
  0x9e   : > { %v1212_v50 = vpop.permute.xlu0 %1211  ;;  %1113 = vmatprep.mubr.msk.f32.mxu0 %vm547_vm4, %v530_v47  ;;  %1125 = vmatprep.mubr.msk.f32.mxu1 %vm547_vm4, %v538_v48 }
  0x9f   : > { %1114 = vmatmul.mubr.msk.f32.gmra.mrb[2].mxu0 %vm547_vm4, %v531_v45  ;;  %1126 = vmatmul.mubr.msk.f32.gmra.mrb[2].mxu1 %vm547_vm4, %v539_v46  ;;  %v1214_v7 = vunpack.i.h.bf16 %v1212_v50  ;;  %v1213_v16 = vunpack.i.l.bf16 %v1212_v50  ;;  %v516_v55 = vsel %vm510_vm2, %v1413_v63, %v1218_v37  ;;  %v524_v56 = vsel %vm510_vm2, %v1420_v8, %v1219_v10 }
  0xa0   : > { %v1227_v49 = vpop.permute.xlu1 %1226 }
  0xa1   : > { %v1229_v51 = vunpack.i.h.bf16 %v1227_v49  ;;  %v1228_v52 = vunpack.i.l.bf16 %v1227_v49  ;;  %v515_v58 = vsel %vm510_vm2, %v1391_v41, %v1213_v16  ;;  %v523_v17 = vsel %vm510_vm2, %v1393_v43, %v1214_v7 }
  0xa2   : > { %v1222_v11 = vpop.permute.xlu0 %1221 }
  0xa3   : > { %v1224_v53 = vunpack.i.h.bf16 %v1222_v11  ;;  %v1223_v54 = vunpack.i.l.bf16 %v1222_v11  ;;  %v533_v59 = vsel %vm527_vm3, %v516_v55, %v1228_v52  ;;  %v541_v60 = vsel %vm527_vm3, %v524_v56, %v1229_v51 }
  0xa4   : > { %v1237_v57 = vpop.permute.xlu1 %1236 }
  0xa5   : > { %v532_v61 = vsel %vm527_vm3, %v515_v58, %v1223_v54  ;;  %v540_v62 = vsel %vm527_vm3, %v523_v17, %v1224_v53  ;;  %v1239_v63 = vunpack.i.h.bf16 %v1237_v57  ;;  %v1238_v8 = vunpack.i.l.bf16 %v1237_v57 }
  0xa6   : > { %v1232_v0 = vpop.permute.xlu0 %1231  ;;  %1116 = vmatprep.mubr.msk.f32.mxu0 %vm547_vm4, %v532_v61  ;;  %1128 = vmatprep.mubr.msk.f32.mxu1 %vm547_vm4, %v540_v62 }
  0xa7   : > { %1117 = vmatmul.mubr.msk.f32.gmra.mrb[4].mxu0 %vm547_vm4, %v533_v59  ;;  %1129 = vmatmul.mubr.msk.f32.gmra.mrb[4].mxu1 %vm547_vm4, %v541_v60  ;;  %v1234_v41 = vunpack.i.h.bf16 %v1232_v0  ;;  %v1233_v43 = vunpack.i.l.bf16 %v1232_v0  ;;  %v518_v19 = vsel %vm510_vm2, %v1429_v20, %v1238_v8  ;;  %v526_v21 = vsel %vm510_vm2, %v1434_v24, %v1239_v63 }
  0xa8   : > { %v1247_v1 = vpop.permute.xlu1 %1246 }
  0xa9   : > { %v1249_v2 = vunpack.i.h.bf16 %v1247_v1  ;;  %v1248_v4 = vunpack.i.l.bf16 %v1247_v1  ;;  %v517_v22 = vsel %vm510_vm2, %v1418_v3, %v1233_v43  ;;  %v525_v23 = vsel %vm510_vm2, %v1422_v9, %v1234_v41 }
  0xaa   : > { %v1242_v12 = vpop.permute.xlu0 %1241  ;;  %v1284_v3 = vmov 0.0  }
  0xab   : > { %v1244_v13 = vunpack.i.h.bf16 %v1242_v12  ;;  %v1243_v18 = vunpack.i.l.bf16 %v1242_v12  ;;  %v535_v25 = vsel %vm527_vm3, %v518_v19, %v1248_v4  ;;  %v543_v26 = vsel %vm527_vm3, %v526_v21, %v1249_v2  ;;  %246 = vst [vmem:[%s1540_s7] sm:$0x3] %v1284_v3 }
  0xad   : > { %v534_v27 = vsel %vm527_vm3, %v517_v22, %v1243_v18  ;;  %v542_v5 = vsel %vm527_vm3, %v525_v23, %v1244_v13 }
  0xae   : > { %1119 = vmatprep.mubr.msk.f32.mxu0 %vm547_vm4, %v534_v27  ;;  %1131 = vmatprep.mubr.msk.f32.mxu1 %vm547_vm4, %v542_v5 }
  0xaf   : > { %1120 = vmatmul.mubr.msk.f32.gmra.mrb[6].mxu0 %vm547_vm4, %v535_v25  ;;  %1132 = vmatmul.mubr.msk.f32.gmra.mrb[6].mxu1 %vm547_vm4, %v543_v26 }
  0xb2   : > { %v910_v47 = vld [vmem:[%s1540_s7] sm:$0x3] }
 0x168   : > { %v1124_v9 = vpop.f32.mrb[0].mxu1 }
 0x169   : > { %v702_v20 = vpop.f32.mrb[1].mxu1 }
 0x16a   : > { %v1112_v24 = vpop.f32.mrb[0].mxu0 }
 0x16b   : > { %v933_v6 = vmul.f32 %v1112_v24, %v1112_v24  ;;  %v662_v28 = vpop.f32.mrb[1].mxu0 }
 0x16c   : > { %v911_v29 = vadd.f32 %v1112_v24, %v662_v28  ;;  %v932_v30 = vmul.f32 %v662_v28, %v662_v28 }
 0x16e   : > { %v926_v31 = vrot.slane %v911_v29, 4  ;;  %v948_v32 = vadd.f32 %v933_v6, %v932_v30 }
 0x170   : > { %v927_v33 = vadd.f32 %v926_v31, %v911_v29  ;;  %v963_v14 = vrot.slane %v948_v32, 4 }
 0x172   : > { %v928_v34 = vrot.slane %v927_v33, 2  ;;  %v964_v35 = vadd.f32 %v963_v14, %v948_v32  ;;  %v1115_v15 = vpop.f32.mrb[2].mxu0  ;;  %v1127_v36 = vpop.f32.mrb[2].mxu1 }
 0x173   : > { %v672_v38 = vpop.f32.mrb[3].mxu0  ;;  %v712_v39 = vpop.f32.mrb[3].mxu1 }
 0x174   : > { %v929_v40 = vadd.f32 %v928_v34, %v927_v33  ;;  %v965_v42 = vrot.slane %v964_v35, 2 }
 0x176   : > { %v930_v44 = vrot.slane %v929_v40, 1  ;;  %v966_v45 = vadd.f32 %v965_v42, %v964_v35 }
 0x178   : > { %v967_v46 = vrot.slane %v966_v45, 1  ;;  %v931_v48 = vadd.f32 %v930_v44, %v929_v40 }
 0x17a   : > { %v968_v50 = vadd.f32 %v967_v46, %v966_v45  ;;  %v1118_v10 = vpop.f32.mrb[4].mxu0  ;;  %v1130_v37 = vpop.f32.mrb[4].mxu1 }
 0x17b   : > { %v682_v7 = vpop.f32.mrb[5].mxu0  ;;  %v722_v16 = vpop.f32.mrb[5].mxu1 }
 0x17c   : > { %v970_v49 = vsel %vm969_vm5, %v931_v48, %v968_v50 }
 0x17d   : > { %v971_v51 = vadd.f32 %v970_v49, %v910_v47 }
 0x17f   : > { %972 = vst [vmem:[%s1540_s7] sm:$0x3] %v971_v51 }
 0x182   : > { %v1121_v52 = vpop.f32.mrb[6].mxu0  ;;  %v1133_v11 = vpop.f32.mrb[6].mxu1 }
 0x183   : > { %v692_v53 = vpop.f32.mrb[7].mxu0  ;;  %v732_v54 = vpop.f32.mrb[7].mxu1 }
 0x184 PF: > { %s13_s14 = sadd.s32 1, %s1280_s14   ;;  %s1558_s12 = smov %s1276_s13 }
 0x185   : > { %p10_p5 = scmp.ge.s32.totalorder %s13_s14, 4   ;;  %s1559_s13 = smov %s1561_s15 }
 0x187   :  { %12 = sbr.rel (!%p10_p5) target bundleno = 2 (0x2), region = 77 }

// kernel: conv_block_forward.3
= control target key start
LH: loop header
LB: loop body
LE: loop exit
PB: predicated region body
PF: predicated region fallthrough
CT: control target
= control target key end

     0   :  { %s1743_s0 = inlined_call_operand.vmem [shape: bf16[2,130,8], index: 0, kind: input, shape index: {}]   ;;  %s1744_s1 = inlined_call_operand.vmem [shape: bf16[2,1,2,8], index: 1, kind: input, shape index: {}]   ;;  %s1745_s2 = inlined_call_operand.vmem [shape: f32[24,128], index: 2, kind: input, shape index: {}]   ;;  %s1746_s3 = inlined_call_operand.vmem [shape: f32[2,128], index: 3, kind: input, shape index: {}]   ;;  %s1747_s4 = inlined_call_operand.<no memory space> [shape: f32[1], index: 4, kind: input, shape index: {}]   ;;  %s1748_s5 = inlined_call_operand.hbm [shape: f32[2,8,128], index: 5, kind: output, shape index: {}]  }
   0x1   :  { %10 = sst [smem:[#allocation2]] %s1747_s4 }
   0x2   :  { %11 = vsyncpa [#allocation4], 0 }
   0x3   :  { %13 = vsyncpa [#allocation4 + $0x1], 0  ;;  %s1372_s20 = smov 0   ;;  %s1374_s21 = smov 0  }
   0x4   :  { %s1376_s22 = smov 0   ;;  %s1378_s23 = smov 0  }
   0x5   :  { %s1380_s24 = smov 0   ;;  %s1382_s25 = smov 0  }
   0x6 LB: > { %s1018_s4 = sadd.s32 4294967295, %s1334_s25   ;;  %s1019_s26 = sadd.s32 4294967294, %s1334_s25   ;;  %s1334_s25 = sphi %s1382_s25, %s19_s25   ;;  %s1330_s24 = sphi %s1380_s24, %s1755_s24   ;;  %s1326_s23 = sphi %s1378_s23, %s1754_s23   ;;  %s1322_s22 = sphi %s1376_s22, %s1753_s22   ;;  %s1318_s21 = sphi %s1374_s21, %s1752_s21   ;;  %s1314_s20 = sphi %s1372_s20, %s1751_s20  }
   0x7   : > { %s31_s27 = sadd.s32 1, %s1330_s24  ;;  %s159_s28 = sadd.s32 1, %s1322_s22 }
   0x8   : > { %p33_p0 = scmp.ge.s32.totalorder %s31_s27, 2  ;;  %p169_p1 = scmp.ne.s32.totalorder %s1322_s22, %s1318_s21 }
   0x9   : > { %p170_p2 = scmp.eq.s32.totalorder %s1018_s4, 1  ;;  %p175_p3 = scmp.ne.s32.totalorder %s1318_s21, %s1314_s20 }
   0xa   : > { %s1757_s27 = smov (%p33_p0, %s31_s27), 0  ;;  %p176_p5 = scmp.eq.s32.totalorder %s1019_s26, 1 }
   0xb   : > { %p1412_p4 = por %p170_p2, %p169_p1  ;;  %s154_s30 = ssub.s32 %s1330_s24, %s1757_s27 }
   0xc   : > { %p1022_p6 = scmp.ge.s32.totalorder %s1334_s25, 1  ;;  %p157_p7 = scmp.eq.s32.totalorder %s154_s30, 0 }
   0xd   : > { %p1419_p8 = por %p176_p5, %p175_p3  ;;  %p233_p9 = scmp.lt.s32.totalorder %s1334_s25, 3 }
   0xe   : > { %s1425_s7 = scalar_select %p157_p7, %s1322_s22, %s159_s28  }
   0xf   : > { %p234_p10 = pnand %p1022_p6, %p233_p9 }
  0x10   : > { %p280_p11 = scmp.lt.s32.totalorder (!%p234_p10), %s1326_s23, 1  ;;  %v596_v0 = vld [vmem:[%s1745_s2] sm:$0xff] (!%p234_p10)  ;;  %v597_v1 = vld [vmem:[%s1745_s2 + $0x8] sm:$0xff] (!%p234_p10)  ;;  %vm398_vm0 = vcmask (!%p234_p10), 1046528   ;;  %vm480_vm1 = vcmask (!%p234_p10), 1045504   ;;  %v598_v35 = vld [vmem:[%s1745_s2 + $0x10] sm:$0xff] (!%p234_p10) }
  0x11   : > { %237 = sbr.rel (%p234_p10) target bundleno = 523 (0x20b), region = 40  ;;  %v1102_v2 = vpack.c.bf16 (!%p234_p10), %v597_v1, %v596_v0  ;;  %s1336_s19 = smov (!%p234_p10), 8   ;;  %vm562_vm2 = vcmask (!%p234_p10), 64512   ;;  %vm579_vm3 = vcmask (!%p234_p10), 130048   ;;  %vm599_vm4 = vcmask (!%p234_p10), 195584  }
  0x12   : > { %s1337_s4 = smov (!%p234_p10), 16   ;;  %s834_s10 = sld [smem:[#allocation2]] (!%p234_p10) }
  0x13   : > { %1103 = vmatprep.subr.bf16.mxu0 (!%p234_p10), %v1102_v2  ;;  %1106 = vmatprep.subr.bf16.mxu1 (!%p234_p10), %v1102_v2  ;;  %s272_s11 = sand.u32 (!%p234_p10), 1, %s1318_s21   ;;  %s1050_s15 = sshll.u32 (!%p234_p10), %s1326_s23, 7 }
  0x14   : > { %1105 = vmatpush3.bf16.msra.mxu0 (!%p234_p10), %v1102_v2  ;;  %1108 = vmatpush3.bf16.msra.mxu1 (!%p234_p10), %v1102_v2  ;;  %s1023_s12 = sshll.u32 (!%p234_p10), %s272_s11, 3  ;;  %s1698_s18 = scalar_lea.hbm (!%p234_p10), %s1748_s5, %s1050_s15 }
  0x15   : > { %1076 = vmatprep.subr.mxu0 (!%p234_p10), %v598_v35  ;;  %1107 = vmatprep.subr.mxu1 (!%p234_p10), %v598_v35  ;;  %s1338_s26 = smov (!%p234_p10), [#allocation3]  }
  0x18   : > { %s1429_s8 = scalar_select %p280_p11, %s1326_s23, 1  ;;  %1077 = vmatpush3.msra.mxu0 %v598_v35  ;;  %1109 = vmatpush3.msra.mxu1 %v598_v35 }
  0x19   : > { %s1260_s23 = sshll.u32 %s1338_s26, 4  ;;  %s1261_s23 = int_to_ptr.vmem [resolvable:$false] %s1260_s23 }
  0x1a   : > { %s1110_s13 = smul.u32 68, %s1429_s8  ;;  %s298_s30 = scalar_lea.vmem %s1744_s1, %s1429_s8 }
  0x1b   : > { %s1262_s28 = scalar_lea.vmem %s1261_s23, 256 }
  0x1c   : > { %s1441_s16 = scalar_lea.vmem %s1743_s0, %s1110_s13  ;;  %s274_s13 = scalar_lea.vmem [#allocation3], %s1023_s12 }
  0x1d   : > { %v1248_v3 = vld [vmem:[%s1441_s16] sm:$0xff]   ;;  %v1249_v4 = vld [vmem:[%s1441_s16 + $0x8] sm:$0xff]   ;;  %v1250_v5 = vld [vmem:[%s1441_s16 + $0x10] sm:$0xff]   ;;  %s932_s14 = sshll.u32 %s274_s13, 4  ;;  %s1693_s14 = int_to_ptr.vmem [resolvable:$true] %s932_s14 }
  0x1e   : > { %v1446_v6 = vunpack.c.l.bf16 %v1248_v3  ;;  %v1448_v7 = vunpack.c.h.bf16 %v1248_v3  ;;  %v1450_v8 = vunpack.c.l.bf16 %v1249_v4  ;;  %v1452_v9 = vunpack.c.h.bf16 %v1249_v4  ;;  %v1251_v11 = vld [vmem:[%s1441_s16 + $0x18] sm:$0xff]   ;;  %v1252_v17 = vld [vmem:[%s1441_s16 + $0x20] sm:$0xff]   ;;  %v1253_v26 = vld [vmem:[%s1441_s16 + $0x28] sm:$0xff]   ;;  %p1263_p1 = scmp.lt.s32.totalorder %s1693_s14, %s1261_s23 }
  0x1f   : > { %v1454_v10 = vunpack.c.l.bf16 %v1250_v5  ;;  %v1457_v12 = vunpack.c.h.bf16 %v1250_v5  ;;  %v1482_v36 = vunpack.c.l.bf16 %v1251_v11  ;;  %v1486_v39 = vunpack.c.h.bf16 %v1251_v11  ;;  %v1254_v56 = vld [vmem:[%s1441_s16 + $0x30] sm:$0xff]   ;;  %v1255_v61 = vld [vmem:[%s1441_s16 + $0x38] sm:$0xff]  }
  0x20   : > { %v399_v13 = vrot.slane %v1446_v6, 1  ;;  %v400_v14 = vrot.slane %v1448_v7, 1  ;;  %v402_v15 = vrot.slane %v1450_v8, 1  ;;  %v404_v16 = vrot.slane %v1452_v9, 1 }
  0x21   : > { %v406_v18 = vrot.slane %v1454_v10, 1  ;;  %v481_v19 = vrot.slane %v1446_v6, 2  ;;  %v482_v20 = vrot.slane %v1448_v7, 2  ;;  %v484_v21 = vrot.slane %v1450_v8, 2 }
  0x22   : > { %v401_v22 = vsel %vm398_vm0, %v399_v13, %v400_v14  ;;  %v403_v23 = vsel %vm398_vm0, %v400_v14, %v402_v15  ;;  %v405_v24 = vsel %vm398_vm0, %v402_v15, %v404_v16  ;;  %v486_v25 = vrot.slane %v1452_v9, 2 }
  0x23   : > { %v1168_v27 = vpack.i.bf16 %v403_v23, %v401_v22  ;;  %v407_v28 = vsel %vm398_vm0, %v404_v16, %v406_v18  ;;  %v483_v29 = vsel %vm480_vm1, %v481_v19, %v482_v20  ;;  %v485_v30 = vsel %vm480_vm1, %v482_v20, %v484_v21 }
  0x24   : > { %v1178_v31 = vpack.i.bf16 %v407_v28, %v405_v24  ;;  %v1173_v32 = vpack.i.bf16 %v485_v30, %v483_v29  ;;  %v487_v33 = vsel %vm480_vm1, %v484_v21, %v486_v25  ;;  %v488_v34 = vrot.slane %v1454_v10, 2 }
  0x25   : > { %1169 = vrot.lane.b32.xlu0 %v1168_v27, %s1336_s19  ;;  %v408_v37 = vrot.slane %v1457_v12, 1  ;;  %v490_v38 = vrot.slane %v1457_v12, 2  ;;  %v1490_v41 = vunpack.c.l.bf16 %v1252_v17  ;;  %v1492_v42 = vunpack.c.h.bf16 %v1252_v17 }
  0x26   : > { %1179 = vrot.lane.b32.xlu1 %v1178_v31, %s1336_s19  ;;  %v489_v40 = vsel %vm480_vm1, %v486_v25, %v488_v34  ;;  %v1494_v43 = vunpack.c.l.bf16 %v1253_v26  ;;  %v410_v46 = vrot.slane %v1482_v36, 1  ;;  %v492_v48 = vrot.slane %v1482_v36, 2 }
  0x27   : > { %v1183_v44 = vpack.i.bf16 %v489_v40, %v487_v33  ;;  %v409_v45 = vsel %vm398_vm0, %v406_v18, %v408_v37  ;;  %v491_v47 = vsel %vm480_vm1, %v488_v34, %v490_v38  ;;  %v412_v49 = vrot.slane %v1486_v39, 1  ;;  %v315_v18 = vld [vmem:[%s298_s30] sm:$0x1] }
  0x28   : > { %v414_v50 = vrot.slane %v1490_v41, 1  ;;  %v494_v51 = vrot.slane %v1486_v39, 2  ;;  %v411_v52 = vsel %vm398_vm0, %v408_v37, %v410_v46  ;;  %v496_v53 = vrot.slane %v1490_v41, 2 }
  0x29   : > { %1174 = vrot.lane.b32.xlu0 %v1173_v32, %s1337_s4  ;;  %v416_v54 = vrot.slane %v1492_v42, 1  ;;  %v418_v55 = vrot.slane %v1494_v43, 1  ;;  %v1188_v57 = vpack.i.bf16 %v411_v52, %v409_v45  ;;  %v493_v58 = vsel %vm480_vm1, %v490_v38, %v492_v48 }
  0x2a   : > { %1184 = vrot.lane.b32.xlu1 %v1183_v44, %s1337_s4  ;;  %v413_v59 = vsel %vm398_vm0, %v410_v46, %v412_v49  ;;  %v415_v60 = vsel %vm398_vm0, %v412_v49, %v414_v50  ;;  %v1193_v62 = vpack.i.bf16 %v493_v58, %v491_v47  ;;  %v495_v63 = vsel %vm480_vm1, %v492_v48, %v494_v51 }
  0x2b   : > { %v497_v0 = vsel %vm480_vm1, %v494_v51, %v496_v53  ;;  %v1198_v1 = vpack.i.bf16 %v415_v60, %v413_v59  ;;  %v498_v3 = vrot.slane %v1492_v42, 2  ;;  %v417_v4 = vsel %vm398_vm0, %v414_v50, %v416_v54 }
  0x2c   : > { %v1203_v2 = vpack.i.bf16 %v497_v0, %v495_v63  ;;  %v500_v5 = vrot.slane %v1494_v43, 2  ;;  %v1524_v11 = vunpack.c.h.bf16 %v1253_v26  ;;  %v1526_v13 = vunpack.c.l.bf16 %v1254_v56 }
  0x2d   : > { %1189 = vrot.lane.b32.xlu0 %v1188_v57, %s1336_s19  ;;  %v419_v14 = vsel %vm398_vm0, %v416_v54, %v418_v55  ;;  %v499_v15 = vsel %vm480_vm1, %v496_v53, %v498_v3  ;;  %v1531_v16 = vunpack.c.h.bf16 %v1254_v56  ;;  %v1533_v17 = vunpack.c.l.bf16 %v1255_v61 }
  0x2e   : > { %1194 = vrot.lane.b32.xlu1 %v1193_v62, %s1337_s4  ;;  %v501_v19 = vsel %vm480_vm1, %v498_v3, %v500_v5  ;;  %v420_v20 = vrot.slane %v1524_v11, 1  ;;  %v422_v21 = vrot.slane %v1526_v13, 1  ;;  %v502_v22 = vrot.slane %v1524_v11, 2 }
  0x2f   : > { %v504_v23 = vrot.slane %v1526_v13, 2  ;;  %v1208_v24 = vpack.i.bf16 %v419_v14, %v417_v4  ;;  %v1213_v25 = vpack.i.bf16 %v501_v19, %v499_v15  ;;  %v1541_v26 = vunpack.c.h.bf16 %v1255_v61 }
  0x30   : > { %v380_v27 = vunpack.c.l.bf16 %v315_v18  ;;  %v421_v28 = vsel %vm398_vm0, %v418_v55, %v420_v20  ;;  %v423_v29 = vsel %vm398_vm0, %v420_v20, %v422_v21  ;;  %v424_v30 = vrot.slane %v1531_v16, 1 }
  0x31   : > { %1199 = vrot.lane.b32.xlu0 %v1198_v1, %s1336_s19  ;;  %v426_v31 = vrot.slane %v1533_v17, 1  ;;  %v503_v32 = vsel %vm480_vm1, %v500_v5, %v502_v22  ;;  %v505_v33 = vsel %vm480_vm1, %v502_v22, %v504_v23  ;;  %v506_v34 = vrot.slane %v1531_v16, 2 }
  0x32   : > { %1204 = vrot.lane.b32.xlu1 %v1203_v2, %s1337_s4  ;;  %v508_v35 = vrot.slane %v1533_v17, 2  ;;  %v1218_v37 = vpack.i.bf16 %v423_v29, %v421_v28  ;;  %v430_v38 = vrot.slane %v380_v27, 1  ;;  %v1223_v40 = vpack.i.bf16 %v505_v33, %v503_v32 }
  0x33   : > { %v425_v44 = vsel %vm398_vm0, %v422_v21, %v424_v30  ;;  %v427_v45 = vsel %vm398_vm0, %v424_v30, %v426_v31  ;;  %v428_v46 = vrot.slane %v1541_v26, 1  ;;  %v507_v47 = vsel %vm480_vm1, %v504_v23, %v506_v34 }
  0x34   : > { %v509_v48 = vsel %vm480_vm1, %v506_v34, %v508_v35  ;;  %v510_v49 = vrot.slane %v1541_v26, 2  ;;  %v512_v50 = vrot.slane %v380_v27, 2  ;;  %v1228_v51 = vpack.i.bf16 %v427_v45, %v425_v44 }
  0x35   : > { %1209 = vrot.lane.b32.xlu0 %v1208_v24, %s1336_s19  ;;  %v1233_v52 = vpack.i.bf16 %v509_v48, %v507_v47  ;;  %v429_v53 = vsel %vm398_vm0, %v426_v31, %v428_v46  ;;  %v431_v54 = vsel %vm398_vm0, %v428_v46, %v430_v38 }
  0x36   : > { %1214 = vrot.lane.b32.xlu1 %v1213_v25, %s1337_s4  ;;  %v511_v55 = vsel %vm480_vm1, %v508_v35, %v510_v49  ;;  %v513_v56 = vsel %vm480_vm1, %v510_v49, %v512_v50  ;;  %v1238_v57 = vpack.i.bf16 %v431_v54, %v429_v53 }
  0x37   : > { %v1243_v58 = vpack.i.bf16 %v513_v56, %v511_v55 }
  0x39   : > { %1219 = vrot.lane.b32.xlu0 %v1218_v37, %s1336_s19 }
  0x3a   : > { %1224 = vrot.lane.b32.xlu1 %v1223_v40, %s1337_s4 }
  0x3d   : > { %1229 = vrot.lane.b32.xlu0 %v1228_v51, %s1336_s19 }
  0x3e   : > { %1234 = vrot.lane.b32.xlu1 %v1233_v52, %s1337_s4 }
  0x41   : > { %1239 = vrot.lane.b32.xlu0 %v1238_v57, %s1336_s19  ;;  %s918_s19 = scalar_lea.sflag [#allocation4], %s272_s11 }
  0x42   : > { %1244 = vrot.lane.b32.xlu1 %v1243_v58, %s1337_s4  ;;  %s1256_s4 = scalar_lea.vmem %s1693_s14, 128 }
  0x43   : > { %p1257_p12 = scmp.ne.s32.totalorder %s1693_s14, %s1256_s4  ;;  %p1264_p2 = scmp.lt.s32.totalorder %s1262_s28, %s1256_s4 }
  0x45   : > { %p1258_p13 = pnand %p1257_p12, %p1412_p4  ;;  %p1265_p3 = por %p1264_p2, %p1263_p1 }
  0x47   : > { %p1259_p0 = pneg %p1258_p13 }
  0x49   : > { %p1266_p5 = pnand %p1265_p3, %p1259_p0 }
  0x97   : > { %v1170_v59 = vpop.permute.xlu0 %1169 }
  0x98   : > { %v1180_v60 = vpop.permute.xlu1 %1179  ;;  %v1172_v61 = vunpack.i.h.bf16 %v1170_v59  ;;  %v1171_v62 = vunpack.i.l.bf16 %v1170_v59 }
  0x99   : > { %v1181_v63 = vunpack.i.l.bf16 %v1180_v60  ;;  %v1182_v0 = vunpack.i.h.bf16 %v1180_v60 }
  0x9a   : > { %v563_v18 = vsel %vm562_vm2, %v1446_v6, %v1171_v62  ;;  %v564_v19 = vsel %vm562_vm2, %v1448_v7, %v1172_v61 }
  0x9b   : > { %v1175_v1 = vpop.permute.xlu0 %1174  ;;  %v565_v5 = vsel %vm562_vm2, %v1450_v8, %v1181_v63  ;;  %v566_v22 = vsel %vm562_vm2, %v1452_v9, %v1182_v0 }
  0x9c   : > { %v1177_v2 = vunpack.i.h.bf16 %v1175_v1  ;;  %v1176_v3 = vunpack.i.l.bf16 %v1175_v1  ;;  %v1185_v4 = vpop.permute.xlu1 %1184 }
  0x9d   : > { %v1187_v14 = vunpack.i.h.bf16 %v1185_v4  ;;  %v1186_v15 = vunpack.i.l.bf16 %v1185_v4 }
  0x9e   : > { %v580_v20 = vsel %vm579_vm3, %v563_v18, %v1176_v3  ;;  %v581_v21 = vsel %vm579_vm3, %v564_v19, %v1177_v2 }
  0x9f   : > { %1078 = vmatprep.mubr.msk.f32.mxu0 %vm599_vm4, %v580_v20  ;;  %v582_v23 = vsel %vm579_vm3, %v565_v5, %v1186_v15  ;;  %v1190_v8 = vpop.permute.xlu0 %1189  ;;  %v583_v7 = vsel %vm579_vm3, %v566_v22, %v1187_v14 }
  0xa0   : > { %1079 = vmatmul.mubr.msk.f32.vlgmr.msra.gmra.mrb[0].mxu0 %vm599_vm4, %v581_v21  ;;  %v1192_v24 = vunpack.i.h.bf16 %v1190_v8  ;;  %v1191_v25 = vunpack.i.l.bf16 %v1190_v8  ;;  %v1195_v6 = vpop.permute.xlu1 %1194 }
  0xa1   : > { %1081 = vmatprep.mubr.msk.f32.mxu0 %vm599_vm4, %v582_v23  ;;  %v1197_v27 = vunpack.i.h.bf16 %v1195_v6  ;;  %v1196_v28 = vunpack.i.l.bf16 %v1195_v6  ;;  %v794_v23 = vlaneseq }
  0xa2   : > { %v567_v29 = vsel %vm562_vm2, %v1454_v10, %v1191_v25  ;;  %v568_v9 = vsel %vm562_vm2, %v1457_v12, %v1192_v24  ;;  %v793_v25 = vld [vmem:[%s1746_s3] sm:$0x3] }
  0xa3   : > { %v584_v30 = vsel %vm579_vm3, %v567_v29, %v1196_v28  ;;  %v1200_v31 = vpop.permute.xlu0 %1199  ;;  %v585_v35 = vsel %vm579_vm3, %v568_v9, %v1197_v27  ;;  %v795_v8 = vshrl.u32 %v794_v23, 7  ;;  %v1643_v9 = vstv %s834_s10 }
  0xa4   : > { %1082 = vmatmul.mubr.msk.f32.gmra.mrb[2].mxu0 %vm599_vm4, %v583_v7  ;;  %v1202_v32 = vunpack.i.h.bf16 %v1200_v31  ;;  %v1201_v33 = vunpack.i.l.bf16 %v1200_v31  ;;  %v1205_v34 = vpop.permute.xlu1 %1204 }
  0xa5   : > { %1084 = vmatprep.mubr.msk.f32.mxu0 %vm599_vm4, %v584_v30  ;;  %v1207_v37 = vunpack.i.h.bf16 %v1205_v34  ;;  %v1206_v38 = vunpack.i.l.bf16 %v1205_v34  ;;  %v796_v24 = vsub.s32 0, %v795_v8 }
  0xa6   : > { %v569_v10 = vsel %vm562_vm2, %v1482_v36, %v1201_v33  ;;  %v570_v12 = vsel %vm562_vm2, %v1486_v39, %v1202_v32 }
  0xa7   : > { %v586_v40 = vsel %vm579_vm3, %v569_v10, %v1206_v38  ;;  %v1210_v44 = vpop.permute.xlu0 %1209  ;;  %v587_v48 = vsel %vm579_vm3, %v570_v12, %v1207_v37  ;;  %v1637_v6 = vrot.slane %v793_v25, %v796_v24 }
  0xa8   : > { %1085 = vmatmul.mubr.msk.f32.gmra.mrb[4].mxu0 %vm599_vm4, %v585_v35  ;;  %v1212_v45 = vunpack.i.h.bf16 %v1210_v44  ;;  %v1211_v46 = vunpack.i.l.bf16 %v1210_v44  ;;  %v1215_v47 = vpop.permute.xlu1 %1214 }
  0xa9   : > { %1087 = vmatprep.mubr.msk.f32.mxu0 %vm599_vm4, %v586_v40  ;;  %v1217_v49 = vunpack.i.h.bf16 %v1215_v47  ;;  %v1216_v50 = vunpack.i.l.bf16 %v1215_v47 }
  0xaa   : > { %v571_v36 = vsel %vm562_vm2, %v1490_v41, %v1211_v46  ;;  %v572_v39 = vsel %vm562_vm2, %v1492_v42, %v1212_v45 }
  0xab   : > { %v588_v51 = vsel %vm579_vm3, %v571_v36, %v1216_v50  ;;  %v589_v52 = vsel %vm579_vm3, %v572_v39, %v1217_v49  ;;  %v1220_v53 = vpop.permute.xlu0 %1219 }
  0xac   : > { %1088 = vmatmul.mubr.msk.f32.gmra.mrb[6].mxu0 %vm599_vm4, %v587_v48  ;;  %1090 = vmatprep.mubr.msk.f32.mxu1 %vm599_vm4, %v588_v51  ;;  %v1222_v54 = vunpack.i.h.bf16 %v1220_v53  ;;  %v1221_v55 = vunpack.i.l.bf16 %v1220_v53  ;;  %v1225_v56 = vpop.permute.xlu1 %1224 }
  0xad   : > { %1091 = vmatmul.mubr.msk.f32.vlgmr.msra.gmra.mrb[0].mxu1 %vm599_vm4, %v589_v52  ;;  %v1227_v57 = vunpack.i.h.bf16 %v1225_v56  ;;  %v1226_v58 = vunpack.i.l.bf16 %v1225_v56 }
  0xae   : > { %v573_v41 = vsel %vm562_vm2, %v1494_v43, %v1221_v55  ;;  %v574_v42 = vsel %vm562_vm2, %v1524_v11, %v1222_v54 }
  0xaf   : > { %v590_v59 = vsel %vm579_vm3, %v573_v41, %v1226_v58  ;;  %v591_v60 = vsel %vm579_vm3, %v574_v42, %v1227_v57  ;;  %v1230_v61 = vpop.permute.xlu0 %1229 }
  0xb0   : > { %1093 = vmatprep.mubr.msk.f32.mxu1 %vm599_vm4, %v590_v59  ;;  %v1232_v62 = vunpack.i.h.bf16 %v1230_v61  ;;  %v1231_v63 = vunpack.i.l.bf16 %v1230_v61  ;;  %v1235_v0 = vpop.permute.xlu1 %1234 }
  0xb1   : > { %1094 = vmatmul.mubr.msk.f32.gmra.mrb[2].mxu1 %vm599_vm4, %v591_v60  ;;  %v1237_v1 = vunpack.i.h.bf16 %v1235_v0  ;;  %v1236_v2 = vunpack.i.l.bf16 %v1235_v0 }
  0xb2   : > { %v575_v43 = vsel %vm562_vm2, %v1526_v13, %v1231_v63  ;;  %v576_v11 = vsel %vm562_vm2, %v1531_v16, %v1232_v62 }
  0xb3   : > { %v592_v3 = vsel %vm579_vm3, %v575_v43, %v1236_v2  ;;  %v593_v4 = vsel %vm579_vm3, %v576_v11, %v1237_v1  ;;  %v1240_v5 = vpop.permute.xlu0 %1239 }
  0xb4   : > { %1096 = vmatprep.mubr.msk.f32.mxu1 %vm599_vm4, %v592_v3  ;;  %v1242_v14 = vunpack.i.h.bf16 %v1240_v5  ;;  %v1241_v15 = vunpack.i.l.bf16 %v1240_v5  ;;  %v1245_v18 = vpop.permute.xlu1 %1244 }
  0xb5   : > { %1097 = vmatmul.mubr.msk.f32.gmra.mrb[4].mxu1 %vm599_vm4, %v593_v4  ;;  %v1247_v19 = vunpack.i.h.bf16 %v1245_v18  ;;  %v1246_v20 = vunpack.i.l.bf16 %v1245_v18 }
  0xb6   : > { %v577_v13 = vsel %vm562_vm2, %v1533_v17, %v1241_v15  ;;  %v578_v16 = vsel %vm562_vm2, %v1541_v26, %v1242_v14  ;;  %v816_v17 = vsub.s32 1, %v795_v8 }
  0xb7   : > { %v594_v21 = vsel %vm579_vm3, %v577_v13, %v1246_v20  ;;  %v595_v22 = vsel %vm579_vm3, %v578_v16, %v1247_v19 }
  0xb8   : > { %1099 = vmatprep.mubr.msk.f32.mxu1 %vm599_vm4, %v594_v21  ;;  %v1639_v7 = vrot.slane %v793_v25, %v816_v17 }
  0xb9   : > { %1100 = vmatmul.mubr.msk.f32.gmra.mrb[6].mxu1 %vm599_vm4, %v595_v22 }
 0x173   : > { %v1080_v26 = vpop.f32.mrb[0].mxu0 }
 0x174   : > { %v799_v27 = vmul.f32 %v1080_v26, %v1637_v6  ;;  %v714_v28 = vpop.f32.mrb[1].mxu0 }
 0x175   : > { %v798_v29 = vmul.f32 %v1637_v6, %v714_v28 }
 0x176   : > { %v819_v30 = vadd.f32 %v1639_v7, %v799_v27 }
 0x177   : > { %v818_v31 = vadd.f32 %v1639_v7, %v798_v29  ;;  %v1083_v32 = vpop.f32.mrb[2].mxu0 }
 0x178   : > { %v724_v33 = vpop.f32.mrb[3].mxu0  ;;  %v801_v37 = vmul.f32 %v1083_v32, %v1637_v6  ;;  %v853_v40 = vmul.f32 %v1643_v9, %v819_v30  ;;  %vm836_vm6 = vcmp.ge.f32.partialorder %v819_v30, 0.0 }
 0x179   : > { %v800_v34 = vmul.f32 %v1637_v6, %v724_v33  ;;  %vm835_vm5 = vcmp.ge.f32.partialorder %v818_v31, 0.0  ;;  %v852_v35 = vmul.f32 %v1643_v9, %v818_v31 }
 0x17a   : > { %v821_v45 = vadd.f32 %v1639_v7, %v801_v37  ;;  %v869_v46 = vsel %vm836_vm6, %v819_v30, %v853_v40 }
 0x17b   : > { %v820_v38 = vadd.f32 %v1639_v7, %v800_v34  ;;  %v868_v10 = vsel %vm835_vm5, %v818_v31, %v852_v35  ;;  %v1086_v12 = vpop.f32.mrb[4].mxu0 }
 0x17c   : > { %884 = vxpose.xlu0.b32.start [1/16] (narrow) %v868_v10, 8  ;;  %v734_v44 = vpop.f32.mrb[5].mxu0  ;;  %v803_v51 = vmul.f32 %v1086_v12, %v1637_v6  ;;  %v855_v54 = vmul.f32 %v1643_v9, %v821_v45  ;;  %vm838_vm8 = vcmp.ge.f32.partialorder %v821_v45, 0.0 }
 0x17d   : > { %v802_v47 = vmul.f32 %v1637_v6, %v734_v44  ;;  %v854_v48 = vmul.f32 %v1643_v9, %v820_v38  ;;  %vm837_vm7 = vcmp.ge.f32.partialorder %v820_v38, 0.0 }
 0x17e   : > { %v823_v57 = vadd.f32 %v1639_v7, %v803_v51  ;;  %v871_v58 = vsel %vm838_vm8, %v821_v45, %v855_v54 }
 0x17f   : > { %v1089_v49 = vpop.f32.mrb[6].mxu0  ;;  %v822_v52 = vadd.f32 %v1639_v7, %v802_v47  ;;  %v870_v53 = vsel %vm837_vm7, %v820_v38, %v854_v48 }
 0x180   : > { %885 = vxpose.xlu0.b32.cont [2/16] (narrow) %v869_v46, 8  ;;  %v744_v50 = vpop.f32.mrb[7].mxu0  ;;  %v1092_v36 = vpop.f32.mrb[0].mxu1  ;;  %v805_v61 = vmul.f32 %v1089_v49, %v1637_v6  ;;  %v857_v0 = vmul.f32 %v1643_v9, %v823_v57  ;;  %vm840_vm10 = vcmp.ge.f32.partialorder %v823_v57, 0.0 }
 0x181   : > { %v754_v39 = vpop.f32.mrb[1].mxu1  ;;  %v804_v41 = vmul.f32 %v1637_v6, %v744_v50  ;;  %v856_v42 = vmul.f32 %v1643_v9, %v822_v52  ;;  %vm839_vm9 = vcmp.ge.f32.partialorder %v822_v52, 0.0  ;;  %v807_v5 = vmul.f32 %v1092_v36, %v1637_v6 }
 0x182   : > { %v825_v43 = vadd.f32 %v1639_v7, %v805_v61  ;;  %v806_v11 = vmul.f32 %v1637_v6, %v754_v39  ;;  %v873_v3 = vsel %vm840_vm10, %v823_v57, %v857_v0 }
 0x183   : > { %v824_v62 = vadd.f32 %v1639_v7, %v804_v41  ;;  %v872_v63 = vsel %vm839_vm9, %v822_v52, %v856_v42  ;;  %v827_v19 = vadd.f32 %v1639_v7, %v807_v5 }
 0x184   : > { %886 = vxpose.xlu0.b32.cont [3/16] (narrow) %v870_v53, 8  ;;  %v1095_v55 = vpop.f32.mrb[2].mxu1  ;;  %v826_v14 = vadd.f32 %v1639_v7, %v806_v11  ;;  %v859_v18 = vmul.f32 %v1643_v9, %v825_v43  ;;  %vm842_vm12 = vcmp.ge.f32.partialorder %v825_v43, 0.0 }
 0x185   : > { %v764_v56 = vpop.f32.mrb[3].mxu1  ;;  %v858_v4 = vmul.f32 %v1643_v9, %v824_v62  ;;  %vm841_vm11 = vcmp.ge.f32.partialorder %v824_v62, 0.0  ;;  %v809_v21 = vmul.f32 %v1095_v55, %v1637_v6  ;;  %v861_v8 = vmul.f32 %v1643_v9, %v827_v19 }
 0x186   : > { %v808_v20 = vmul.f32 %v1637_v6, %v764_v56  ;;  %v875_v13 = vsel %vm842_vm12, %v825_v43, %v859_v18  ;;  %v860_v16 = vmul.f32 %v1643_v9, %v826_v14  ;;  %vm843_vm13 = vcmp.ge.f32.partialorder %v826_v14, 0.0 }
 0x187   : > { %v874_v15 = vsel %vm841_vm11, %v824_v62, %v858_v4  ;;  %vm844_vm14 = vcmp.ge.f32.partialorder %v827_v19, 0.0  ;;  %v829_v24 = vadd.f32 %v1639_v7, %v809_v21 }
 0x188   : > { %887 = vxpose.xlu0.b32.cont [4/16] (narrow) %v871_v58, 8  ;;  %v1098_v59 = vpop.f32.mrb[4].mxu1  ;;  %v828_v22 = vadd.f32 %v1639_v7, %v808_v20  ;;  %v876_v23 = vsel %vm843_vm13, %v826_v14, %v860_v16  ;;  %v877_v17 = vsel %vm844_vm14, %v827_v19, %v861_v8 }
 0x189   : > { %v774_v60 = vpop.f32.mrb[5].mxu1  ;;  %v811_v27 = vmul.f32 %v1098_v59, %v1637_v6  ;;  %v863_v30 = vmul.f32 %v1643_v9, %v829_v24  ;;  %vm846_vm0 = vcmp.ge.f32.partialorder %v829_v24, 0.0 }
 0x18a   : > { %v810_v25 = vmul.f32 %v1637_v6, %v774_v60  ;;  %v862_v26 = vmul.f32 %v1643_v9, %v828_v22  ;;  %vm845_vm15 = vcmp.ge.f32.partialorder %v828_v22, 0.0 }
 0x18b   : > { %v831_v31 = vadd.f32 %v1639_v7, %v811_v27  ;;  %v879_v33 = vsel %vm846_vm0, %v829_v24, %v863_v30 }
 0x18c   : > { %888 = vxpose.xlu0.b32.cont [5/16] (narrow) %v872_v63, 8  ;;  %v1101_v1 = vpop.f32.mrb[6].mxu1  ;;  %v830_v28 = vadd.f32 %v1639_v7, %v810_v25  ;;  %v878_v29 = vsel %vm845_vm15, %v828_v22, %v862_v26 }
 0x18d   : > { %v784_v2 = vpop.f32.mrb[7].mxu1  ;;  %v813_v35 = vmul.f32 %v1101_v1, %v1637_v6  ;;  %v865_v10 = vmul.f32 %v1643_v9, %v831_v31  ;;  %vm848_vm2 = vcmp.ge.f32.partialorder %v831_v31, 0.0 }
 0x18e   : > { %v812_v32 = vmul.f32 %v1637_v6, %v784_v2  ;;  %v864_v34 = vmul.f32 %v1643_v9, %v830_v28  ;;  %vm847_vm1 = vcmp.ge.f32.partialorder %v830_v28, 0.0 }
 0x18f   : > { %v833_v12 = vadd.f32 %v1639_v7, %v813_v35  ;;  %v881_v40 = vsel %vm848_vm2, %v831_v31, %v865_v10 }
 0x190   : > { %889 = vxpose.xlu0.b32.cont [6/16] (narrow) %v873_v3, 8  ;;  %v832_v37 = vadd.f32 %v1639_v7, %v812_v32  ;;  %v880_v38 = vsel %vm847_vm1, %v830_v28, %v864_v34 }
 0x191   : > { %v867_v46 = vmul.f32 %v1643_v9, %v833_v12  ;;  %vm850_vm4 = vcmp.ge.f32.partialorder %v833_v12, 0.0 }
 0x192   : > { %v866_v44 = vmul.f32 %v1643_v9, %v832_v37  ;;  %vm849_vm3 = vcmp.ge.f32.partialorder %v832_v37, 0.0 }
 0x193   : > { %v883_v6 = vsel %vm850_vm4, %v833_v12, %v867_v46 }
 0x194   : > { %890 = vxpose.xlu0.b32.cont [7/16] (narrow) %v874_v15, 8  ;;  %v882_v45 = vsel %vm849_vm3, %v832_v37, %v866_v44 }
 0x198   : > { %891 = vxpose.xlu0.b32.cont [8/16] (narrow) %v875_v13, 8 }
 0x19c   : > { %892 = vxpose.xlu0.b32.cont [9/16] (narrow) %v876_v23, 8 }
 0x1a0   : > { %893 = vxpose.xlu0.b32.cont [10/16] (narrow) %v877_v17, 8 }
 0x1a4   : > { %894 = vxpose.xlu0.b32.cont [11/16] (narrow) %v878_v29, 8 }
 0x1a8   : > { %895 = vxpose.xlu0.b32.cont [12/16] (narrow) %v879_v33, 8 }
 0x1ac   : > { %896 = vxpose.xlu0.b32.cont [13/16] (narrow) %v880_v38, 8 }
 0x1b0   : > { %897 = vxpose.xlu0.b32.cont [14/16] (narrow) %v881_v40, 8 }
 0x1b4   : > { %898 = vxpose.xlu0.b32.cont [15/16] (narrow) %v882_v45, 8 }
 0x1b8   : > { %899 = vxpose.xlu0.b32.end [16/16] (narrow) %v883_v6, 8 }
 0x1fc   : > { %v900_v7 = vpop.trf.xlu0 }
 0x1fd   : > { %916 = vst [vmem:[%s274_s13] sm:$0xff] %v900_v7 }
 0x1fe   : > { %1269 = shalt.err (!%p1266_p5)
}
 0x1ff   : > { %s1270_s30 = scalar_lea.hbm %s1698_s18, 128  ;;  %s1274_s10 = scalar_lea.hbm %s1748_s5, 256 }
 0x200   : > { %p1271_p6 = scmp.ne.s32.totalorder %s1698_s18, %s1270_s30  ;;  %p1275_p10 = scmp.lt.u32.totalorder %s1698_s18, %s1748_s5 }
 0x201   : > { %p1276_p11 = scmp.lt.u32.totalorder %s1274_s10, %s1270_s30  ;;  %p1278_p13 = scmp.lt.u32.totalorder %s1270_s30, %s1698_s18 }
 0x202   : > { %p1272_p7 = pnand %p1271_p6, %p1412_p4 }
 0x203   : > { %p1277_p12 = por %p1276_p11, %p1275_p10 }
 0x204   : > { %p1273_p9 = pneg %p1272_p7 }
 0x205   : > { %p1279_p0 = por %p1278_p13, %p1277_p12 }
 0x207   : > { %p1280_p1 = pnand %p1279_p0, %p1273_p9 }
 0x209   : > { %1283 = shalt.err (!%p1280_p1)
}
 0x20a   : > { %1111 = dma.vmem_to_hbm [thread:$0]  (%p1412_p4), %s1693_s14, 128, %s1698_s18, %s918_s19  }
 0x20b PF: > { %p1117_p2 = scmp.ge.s32.totalorder %s1334_s25, 2  ;;  %s944_s13 = sand.u32 1, %s1314_s20  }
 0x20c   : > { %s945_s15 = scalar_lea.sflag [#allocation4], %s944_s13 }
 0x20d   : > { %p1114_p3 = pnand %p1117_p2, %p1419_p8 }
 0x20f   : > { %1309 = dma.done.wait (!%p1114_p3), %s945_s15, 128  }
 0x210   : > { %1311 = vsyncadd (!%p1114_p3), %s945_s15, 4294967168  ;;  %s19_s25 = sadd.s32 1, %s1334_s25   ;;  %s1751_s20 = smov %s1318_s21 }
 0x211   : > { %p16_p5 = scmp.ge.s32.totalorder %s19_s25, 4   ;;  %s1752_s21 = smov %s1322_s22 }
 0x212   : > { %s1753_s22 = smov %s1425_s7  ;;  %s1754_s23 = smov %s1330_s24 }
 0x213   : > { %s1755_s24 = smov %s1757_s27  ;;  %18 = sbr.rel (!%p16_p5) target bundleno = 6 (0x6), region = 78 }
 0x21a   :  { %950 = vsyncpa [#allocation4], 1 }
 0x21b   :  { %952 = vsyncpa [#allocation4 + $0x1], 1 }

</bundles_post_ra>
